<compile_context>
chip_gen: v7x
topology: tpu7x:2x2x1
jax: 0.10.0
libtpu: 0.0.40
codegen_flags: <defaults>
</compile_context>

<pallas_src>
import functools
from collections import namedtuple

import jax
import jax.numpy as jnp
from jax.experimental import pallas as pl
from jax.experimental.pallas import tpu as pltpu

IMG_SIZE = 28 * 28          # 784
IMG_PAD = 896               # 7 * 128 (lane-aligned)
LANE = 128

Dims = namedtuple("Dims", ["h_pad", "n_pad", "n"])
Tuning = namedtuple("Tuning", ["block_b", "vmem_limit_bytes", "min_grid_steps"])


def _round_up(x, m):
    return ((x + m - 1) // m) * m


def _device_tuning():
    """Per-generation batch tile / VMEM budget (default is v7x-safe)."""
    try:
        kind = jax.devices()[0].device_kind.lower()
    except Exception:
        kind = ""
    if "v5" in kind or "v6" in kind:
        # v5e/v6e: 128 MiB physical VMEM, 1 TensorCore -> large batch tiles,
        # generous scoped-VMEM cap (the scoped default is only 16/32 MiB).
        return Tuning(block_b=512, vmem_limit_bytes=96 * 1024 * 1024,
                      min_grid_steps=1)
    # v7x (and unknown, conservatively): 64 MiB VMEM per TC, 2 TCs -> tighter
    # budget and a >=2-step grid so "parallel" shards across both cores.
    return Tuning(block_b=256, vmem_limit_bytes=48 * 1024 * 1024,
                  min_grid_steps=2)


# -----------------------------------------------------------------------------
# Kernel
# -----------------------------------------------------------------------------
def _vae_kernel(x_ref,
                we_ref, be_ref,          # encoder:    896   -> H_pad
                wh_ref, bh_ref,          # fused head: H_pad -> 2*N_pad (mu|logvar)
                wd_ref, bd_ref,          # decoder:    N_pad -> H_pad
                wo_ref, bo_ref,          # output:     H_pad -> 896
                noise_ref,               # (TM, N_pad) standard normal (0 in pad lanes)
                y_ref, stats_ref,        # (TM, 896), (TM, 2*N_pad)
                *, n_pad):
    def mm(a, w_ref):
        w = w_ref[...]
        # MXU inputs in the (bf16 by default) weight dtype; accumulate in f32
        # so all downstream elementwise math stays f32 (required on v5e).
        return jnp.dot(a.astype(w.dtype), w, preferred_element_type=jnp.float32)

    x = x_ref[...]                                               # (TM, 896)

    # ---- encoder ----
    h_e = jnp.tanh(mm(x, we_ref) + be_ref[...])                  # (TM, H_pad)

    # ---- fused mu|logvar head (single matmul, single bias broadcast) ----
    head = mm(h_e, wh_ref) + bh_ref[...]                         # (TM, 2*N_pad)
    mean = head[:, :n_pad]
    logvar = head[:, n_pad:]

    # ---- reparameterization: z = mean + exp(0.5*logvar)*eps  (== sqrt(exp(lv))*eps)
    sd = jnp.exp(0.5 * logvar)
    z = mean + sd * noise_ref[...]                               # (TM, N_pad)

    # ---- decoder ----
    h_d = jnp.tanh(mm(z, wd_ref) + bd_ref[...])                  # (TM, H_pad)
    logits = mm(h_d, wo_ref) + bo_ref[...]                       # (TM, 896)
    # sigmoid(x) == 0.5*(tanh(x/2)+1): one EUP transcendental on the widest
    # activation instead of exp + divide.
    y = 0.5 * (jnp.tanh(0.5 * logits) + 1.0)

    y_ref[...] = y
    stats_ref[...] = head                                        # lane-dense store


# -----------------------------------------------------------------------------
# Parameter init (PyTorch nn.Linear style) and packing into padded/fused layout
# -----------------------------------------------------------------------------
def init_params(key, h, n):
    """U(-1/sqrt(fan_in), 1/sqrt(fan_in)); weights stored (in, out), bias (1, out)."""
    def linear(k, fan_in, fan_out):
        kw, kb = jax.random.split(k)
        bound = 1.0 / jnp.sqrt(fan_in)
        w = jax.random.uniform(kw, (fan_in, fan_out), jnp.float32, -bound, bound)
        b = jax.random.uniform(kb, (1, fan_out), jnp.float32, -bound, bound)
        return w, b

    k1, k2, k3, k4, k5 = jax.random.split(key, 5)
    we, be = linear(k1, IMG_SIZE, h)     # h_encoder
    wmu, bmu = linear(k2, h, n)          # h_mu
    wlv, blv = linear(k3, h, n)          # h_logvar
    wd, bd = linear(k4, n, h)            # h_decoder
    wo, bo = linear(k5, h, IMG_SIZE)     # output
    return dict(we=we, be=be, wmu=wmu, bmu=bmu, wlv=wlv, blv=blv,
                wd=wd, bd=bd, wo=wo, bo=bo)


def pack_params(params, weight_dtype=jnp.bfloat16):
    """Zero-pad to lane-aligned shapes and fuse the mu/logvar head.

    bf16 is the default (MXU-native on v5e/v6e/v7x, halves weight HBM/VMEM);
    biases stay f32 (tiny, added post-accumulation)."""
    h = params["we"].shape[1]
    n = params["wmu"].shape[1]
    h_pad = _round_up(h, LANE)
    n_pad = _round_up(n, LANE)

    def padw(w, r, c):
        out = jnp.zeros((r, c), jnp.float32).at[:w.shape[0], :w.shape[1]].set(w)
        return out.astype(weight_dtype)

    def padb(b, c):
        return jnp.zeros((1, c), jnp.float32).at[:, :b.shape[1]].set(b)

    we = padw(params["we"], IMG_PAD, h_pad)
    be = padb(params["be"], h_pad)

    # fused head: columns [0:N] = mu, columns [N_pad:N_pad+N] = logvar
    wh = (jnp.zeros((h_pad, 2 * n_pad), jnp.float32)
          .at[:h, :n].set(params["wmu"])
          .at[:h, n_pad:n_pad + n].set(params["wlv"])).astype(weight_dtype)
    bh = (jnp.zeros((1, 2 * n_pad), jnp.float32)
          .at[:, :n].set(params["bmu"])
          .at[:, n_pad:n_pad + n].set(params["blv"]))

    wd = padw(params["wd"], n_pad, h_pad)
    bd = padb(params["bd"], h_pad)
    wo = padw(params["wo"], h_pad, IMG_PAD)
    bo = padb(params["bo"], IMG_PAD)

    packed = dict(we=we, be=be, wh=wh, bh=bh, wd=wd, bd=bd, wo=wo, bo=bo)
    return packed, Dims(h_pad=h_pad, n_pad=n_pad, n=n)


# -----------------------------------------------------------------------------
# Wrapper (jit-wrapped so pad/slice passes fuse with surrounding XLA ops)
# -----------------------------------------------------------------------------
@functools.partial(jax.jit,
                   static_argnames=("dims", "tuning", "single_buffer_weights"))
def vae_forward(x_nchw, packed, noise, *, dims, tuning=None,
                single_buffer_weights=True):
    """Full VAE forward; returns (y, mean, logvar) like the PyTorch module."""
    if tuning is None:
        tuning = _device_tuning()
    B = x_nchw.shape[0]
    n, n_pad = dims.n, dims.n_pad
    io_dtype = packed["we"].dtype        # bf16 weights -> bf16 x stream

    x = x_nchw.reshape(B, IMG_SIZE)      # x.view(-1, 784)

    # Batch tile: multiple of 8 sublanes, capped for VMEM portability; on v7x
    # shrink further so the grid has >= 2 steps (both TensorCores busy).
    tm = min(tuning.block_b, _round_up(B, 8))
    if tuning.min_grid_steps > 1:
        tm = min(tm, max(8, _round_up(
            (B + tuning.min_grid_steps - 1) // tuning.min_grid_steps, 8)))
    b_pad = _round_up(B, tm)

    # TODO(synk): callers keeping data resident on-device should hold x in the
    # padded (B, 896) layout and noise at (b_pad, n_pad) (or draw noise
    # in-kernel via pltpu.prng_seed + pltpu.stateful_normal) to remove these
    # pad passes entirely.
    x_p = jnp.zeros((b_pad, IMG_PAD), io_dtype).at[:B, :IMG_SIZE].set(
        x.astype(io_dtype))
    noise_p = jnp.zeros((b_pad, n_pad), jnp.float32).at[:B, :n].set(
        noise.astype(jnp.float32))

    def batch_spec(cols):
        return pl.BlockSpec((tm, cols), lambda i: (i, 0))

    def resident_spec(arr):
        # Constant index_map -> fetched once, stays VMEM-resident across grid
        # steps.  Single-buffer it: double-buffering an invariant operand only
        # burns VMEM (matters for large H under v7x's 64 MiB/TC).
        if single_buffer_weights:
            return pl.BlockSpec(arr.shape, lambda i: (0, 0),
                                pipeline_mode=pl.Buffered(1))
        return pl.BlockSpec(arr.shape, lambda i: (0, 0))

    kernel = functools.partial(_vae_kernel, n_pad=n_pad)

    y_p, stats = pl.pallas_call(
        kernel,
        out_shape=(jax.ShapeDtypeStruct((b_pad, IMG_PAD), jnp.float32),
                   jax.ShapeDtypeStruct((b_pad, 2 * n_pad), jnp.float32)),
        grid=(b_pad // tm,),
        in_specs=[
            batch_spec(IMG_PAD),                                  # x
            resident_spec(packed["we"]), resident_spec(packed["be"]),
            resident_spec(packed["wh"]), resident_spec(packed["bh"]),
            resident_spec(packed["wd"]), resident_spec(packed["bd"]),
            resident_spec(packed["wo"]), resident_spec(packed["bo"]),
            batch_spec(n_pad),                                    # noise
        ],
        out_specs=(batch_spec(IMG_PAD), batch_spec(2 * n_pad)),
        compiler_params=pltpu.CompilerParams(
            dimension_semantics=("parallel",),                    # megacore
            vmem_limit_bytes=tuning.vmem_limit_bytes),
    )(x_p,
      packed["we"], packed["be"],
      packed["wh"], packed["bh"],
      packed["wd"], packed["bd"],
      packed["wo"], packed["bo"],
      noise_p)

    y = y_p[:B, :IMG_SIZE]
    mean = stats[:B, :n]
    logvar = stats[:B, n_pad:n_pad + n]
    return y, mean, logvar


# -----------------------------------------------------------------------------
# Pure-JAX reference (matches the PyTorch module math, unpadded / unfused)
# -----------------------------------------------------------------------------
def vae_forward_ref(x_nchw, params, noise):
    B = x_nchw.shape[0]
    x = x_nchw.reshape(B, IMG_SIZE).astype(jnp.float32)
    h_e = jnp.tanh(x @ params["we"] + params["be"])
    mean = h_e @ params["wmu"] + params["bmu"]
    logvar = h_e @ params["wlv"] + params["blv"]
    z = mean + jnp.sqrt(jnp.exp(logvar)) * noise
    h_d = jnp.tanh(z @ params["wd"] + params["bd"])
    y = jax.nn.sigmoid(h_d @ params["wo"] + params["bo"])
    return y, mean, logvar


if __name__ == "__main__":
    B, H, N = 2, 32, 8

    key = jax.random.PRNGKey(0)
    k_params, k_x, k_noise = jax.random.split(key, 3)

    params = init_params(k_params, H, N)

    # MNIST-like input in NCHW, values in [0, 1); deterministic reparam noise.
    x = jax.random.uniform(k_x, (B, 1, 28, 28), jnp.float32)
    noise = jax.random.normal(k_noise, (B, N), jnp.float32)

    tuning = _device_tuning()
    y_ref, mean_ref, logvar_ref = vae_forward_ref(x, params, noise)

    # ---- production config: bf16 weights + bf16 x stream (default) ---------
    packed_bf16, dims = pack_params(params)             # weight_dtype = bf16
    single_buffer = True
    try:
        out = vae_forward(x, packed_bf16, noise, dims=dims, tuning=tuning,
                          single_buffer_weights=True)
        jax.block_until_ready(out)
    except Exception:
        # pl.Buffered(1) unsupported on this jax build -> default 2-deep bufs.
        single_buffer = False
        out = vae_forward(x, packed_bf16, noise, dims=dims, tuning=tuning,
                          single_buffer_weights=False)
        jax.block_until_ready(out)

    y, mean, logvar = out
    assert y.shape == (B, IMG_SIZE)
    assert mean.shape == (B, N) and logvar.shape == (B, N)
    assert jnp.allclose(y, y_ref, atol=5e-2), "y mismatch (bf16 path)"
    assert jnp.allclose(mean, mean_ref, atol=5e-2), "mean mismatch (bf16 path)"
    assert jnp.allclose(logvar, logvar_ref, atol=5e-2), "logvar mismatch (bf16 path)"

    # ---- exactness config: f32 weights, strict check ------------------------
    packed_f32, dims32 = pack_params(params, weight_dtype=jnp.float32)
    y32, mean32, logvar32 = vae_forward(x, packed_f32, noise, dims=dims32,
                                        tuning=tuning,
                                        single_buffer_weights=single_buffer)
    jax.block_until_ready((y32, mean32, logvar32))
    assert jnp.allclose(y32, y_ref, atol=1e-4), "y mismatch (f32 path)"
    assert jnp.allclose(mean32, mean_ref, atol=1e-4), "mean mismatch (f32 path)"
    assert jnp.allclose(logvar32, logvar_ref, atol=1e-4), "logvar mismatch (f32 path)"

    print("KERNEL_OK")
</pallas_src>

<mosaic_0001>
module attributes {stable_mosaic.version = 11 : i64} {
  func.func @_vae_kernel(%arg0: i32, %arg1: memref<8x896xbf16, #tpu.memory_space<vmem>>, %arg2: memref<896x128xbf16, #tpu.memory_space<vmem>>, %arg3: memref<1x128xf32, #tpu.memory_space<vmem>>, %arg4: memref<128x256xbf16, #tpu.memory_space<vmem>>, %arg5: memref<1x256xf32, #tpu.memory_space<vmem>>, %arg6: memref<128x128xbf16, #tpu.memory_space<vmem>>, %arg7: memref<1x128xf32, #tpu.memory_space<vmem>>, %arg8: memref<128x896xbf16, #tpu.memory_space<vmem>>, %arg9: memref<1x896xf32, #tpu.memory_space<vmem>>, %arg10: memref<8x128xf32, #tpu.memory_space<vmem>>, %arg11: memref<8x896xf32, #tpu.memory_space<vmem>>, %arg12: memref<8x256xf32, #tpu.memory_space<vmem>>) attributes {dimension_semantics = [#tpu.dimension_semantics<parallel>], iteration_bounds = array<i64: 1>, scalar_prefetch = 0 : i64, scratch_operands = 0 : i64, tpu.core_type = #tpu.core_type<tc>, window_params = [{transform_indices = @transform_0, window_bounds = array<i64: 8, 896>}, {pipeline_mode = #tpu.pipeline_mode<synchronous>, transform_indices = @transform_1, window_bounds = array<i64: 896, 128>}, {pipeline_mode = #tpu.pipeline_mode<synchronous>, transform_indices = @transform_2, window_bounds = array<i64: 1, 128>}, {pipeline_mode = #tpu.pipeline_mode<synchronous>, transform_indices = @transform_3, window_bounds = array<i64: 128, 256>}, {pipeline_mode = #tpu.pipeline_mode<synchronous>, transform_indices = @transform_4, window_bounds = array<i64: 1, 256>}, {pipeline_mode = #tpu.pipeline_mode<synchronous>, transform_indices = @transform_5, window_bounds = array<i64: 128, 128>}, {pipeline_mode = #tpu.pipeline_mode<synchronous>, transform_indices = @transform_6, window_bounds = array<i64: 1, 128>}, {pipeline_mode = #tpu.pipeline_mode<synchronous>, transform_indices = @transform_7, window_bounds = array<i64: 128, 896>}, {pipeline_mode = #tpu.pipeline_mode<synchronous>, transform_indices = @transform_8, window_bounds = array<i64: 1, 896>}, {transform_indices = @transform_9, window_bounds = array<i64: 8, 128>}, {transform_indices = @transform_10, window_bounds = array<i64: 8, 896>}, {transform_indices = @transform_11, window_bounds = array<i64: 8, 256>}]} {
    %c0 = arith.constant 0 : index
    %c0_0 = arith.constant 0 : index
    %0 = vector.load %arg1[%c0, %c0_0] : memref<8x896xbf16, #tpu.memory_space<vmem>>, vector<8x896xbf16>
    %c0_1 = arith.constant 0 : index
    %c0_2 = arith.constant 0 : index
    %1 = vector.load %arg2[%c0_1, %c0_2] : memref<896x128xbf16, #tpu.memory_space<vmem>>, vector<896x128xbf16>
    %cst = arith.constant dense<0.000000e+00> : vector<8x128xf32>
    %2 = tpu.matmul %0, %1, %cst {dimension_numbers = #tpu.dot_dimension_numbers<[1], [0], [0], [1], [0, 0, 1, 1], [], []>} : vector<8x896xbf16>, vector<896x128xbf16>, vector<8x128xf32> -> vector<8x128xf32>
    %c0_3 = arith.constant 0 : index
    %c0_4 = arith.constant 0 : index
    %3 = vector.load %arg3[%c0_3, %c0_4] : memref<1x128xf32, #tpu.memory_space<vmem>>, vector<1x128xf32>
    %4 = vector.broadcast %3 : vector<1x128xf32> to vector<8x128xf32>
    %5 = arith.addf %2, %4 : vector<8x128xf32>
    %6 = math.tanh %5 : vector<8x128xf32>
    %c0_5 = arith.constant 0 : index
    %c0_6 = arith.constant 0 : index
    %7 = vector.load %arg4[%c0_5, %c0_6] : memref<128x256xbf16, #tpu.memory_space<vmem>>, vector<128x256xbf16>
    %8 = arith.truncf %6 : vector<8x128xf32> to vector<8x128xbf16>
    %cst_7 = arith.constant dense<0.000000e+00> : vector<8x256xf32>
    %9 = tpu.matmul %8, %7, %cst_7 {dimension_numbers = #tpu.dot_dimension_numbers<[1], [0], [0], [1], [0, 0, 1, 1], [], []>} : vector<8x128xbf16>, vector<128x256xbf16>, vector<8x256xf32> -> vector<8x256xf32>
    %c0_8 = arith.constant 0 : index
    %c0_9 = arith.constant 0 : index
    %10 = vector.load %arg5[%c0_8, %c0_9] : memref<1x256xf32, #tpu.memory_space<vmem>>, vector<1x256xf32>
    %11 = vector.broadcast %10 : vector<1x256xf32> to vector<8x256xf32>
    %12 = arith.addf %9, %11 : vector<8x256xf32>
    %13 = vector.extract_strided_slice %12 {offsets = [0, 0], sizes = [8, 128], strides = [1, 1]} : vector<8x256xf32> to vector<8x128xf32>
    %14 = vector.extract_strided_slice %12 {offsets = [0, 128], sizes = [8, 128], strides = [1, 1]} : vector<8x256xf32> to vector<8x128xf32>
    %cst_10 = arith.constant 5.000000e-01 : f32
    %15 = vector.broadcast %cst_10 : f32 to vector<8x128xf32>
    %16 = arith.mulf %15, %14 : vector<8x128xf32>
    %17 = math.exp %16 : vector<8x128xf32>
    %c0_11 = arith.constant 0 : index
    %c0_12 = arith.constant 0 : index
    %18 = vector.load %arg10[%c0_11, %c0_12] : memref<8x128xf32, #tpu.memory_space<vmem>>, vector<8x128xf32>
    %19 = arith.mulf %17, %18 : vector<8x128xf32>
    %20 = arith.addf %13, %19 : vector<8x128xf32>
    %c0_13 = arith.constant 0 : index
    %c0_14 = arith.constant 0 : index
    %21 = vector.load %arg6[%c0_13, %c0_14] : memref<128x128xbf16, #tpu.memory_space<vmem>>, vector<128x128xbf16>
    %22 = arith.truncf %20 : vector<8x128xf32> to vector<8x128xbf16>
    %cst_15 = arith.constant dense<0.000000e+00> : vector<8x128xf32>
    %23 = tpu.matmul %22, %21, %cst_15 {dimension_numbers = #tpu.dot_dimension_numbers<[1], [0], [0], [1], [0, 0, 1, 1], [], []>} : vector<8x128xbf16>, vector<128x128xbf16>, vector<8x128xf32> -> vector<8x128xf32>
    %c0_16 = arith.constant 0 : index
    %c0_17 = arith.constant 0 : index
    %24 = vector.load %arg7[%c0_16, %c0_17] : memref<1x128xf32, #tpu.memory_space<vmem>>, vector<1x128xf32>
    %25 = vector.broadcast %24 : vector<1x128xf32> to vector<8x128xf32>
    %26 = arith.addf %23, %25 : vector<8x128xf32>
    %27 = math.tanh %26 : vector<8x128xf32>
    %c0_18 = arith.constant 0 : index
    %c0_19 = arith.constant 0 : index
    %28 = vector.load %arg8[%c0_18, %c0_19] : memref<128x896xbf16, #tpu.memory_space<vmem>>, vector<128x896xbf16>
    %29 = arith.truncf %27 : vector<8x128xf32> to vector<8x128xbf16>
    %cst_20 = arith.constant dense<0.000000e+00> : vector<8x896xf32>
    %30 = tpu.matmul %29, %28, %cst_20 {dimension_numbers = #tpu.dot_dimension_numbers<[1], [0], [0], [1], [0, 0, 1, 1], [], []>} : vector<8x128xbf16>, vector<128x896xbf16>, vector<8x896xf32> -> vector<8x896xf32>
    %c0_21 = arith.constant 0 : index
    %c0_22 = arith.constant 0 : index
    %31 = vector.load %arg9[%c0_21, %c0_22] : memref<1x896xf32, #tpu.memory_space<vmem>>, vector<1x896xf32>
    %32 = vector.broadcast %31 : vector<1x896xf32> to vector<8x896xf32>
    %33 = arith.addf %30, %32 : vector<8x896xf32>
    %cst_23 = arith.constant 5.000000e-01 : f32
    %34 = vector.broadcast %cst_23 : f32 to vector<8x896xf32>
    %35 = arith.mulf %34, %33 : vector<8x896xf32>
    %36 = math.tanh %35 : vector<8x896xf32>
    %cst_24 = arith.constant 1.000000e+00 : f32
    %37 = vector.broadcast %cst_24 : f32 to vector<8x896xf32>
    %38 = arith.addf %36, %37 : vector<8x896xf32>
    %cst_25 = arith.constant 5.000000e-01 : f32
    %39 = vector.broadcast %cst_25 : f32 to vector<8x896xf32>
    %40 = arith.mulf %39, %38 : vector<8x896xf32>
    %c0_26 = arith.constant 0 : index
    %c0_27 = arith.constant 0 : index
    %41 = vector.load %arg11[%c0_26, %c0_27] : memref<8x896xf32, #tpu.memory_space<vmem>>, vector<8x896xf32>
    tpu.vector_store %arg11[%c0_26, %c0_27], %40 {strides = array<i32>} : memref<8x896xf32, #tpu.memory_space<vmem>>, vector<8x896xf32>,
    %c0_28 = arith.constant 0 : index
    %c0_29 = arith.constant 0 : index
    %42 = vector.load %arg12[%c0_28, %c0_29] : memref<8x256xf32, #tpu.memory_space<vmem>>, vector<8x256xf32>
    tpu.vector_store %arg12[%c0_28, %c0_29], %12 {strides = array<i32>} : memref<8x256xf32, #tpu.memory_space<vmem>>, vector<8x256xf32>,
    return
  }
  func.func @transform_0(%arg0: i32) -> (i32, i32) {
    %c0_i32 = arith.constant 0 : i32
    %c0_i32_0 = arith.constant 0 : i32
    return %arg0, %c0_i32 : i32, i32
  }
  func.func @transform_1(%arg0: i32) -> (i32, i32) {
    %c0_i32 = arith.constant 0 : i32
    %c0_i32_0 = arith.constant 0 : i32
    %c0_i32_1 = arith.constant 0 : i32
    return %c0_i32, %c0_i32_0 : i32, i32
  }
  func.func @transform_2(%arg0: i32) -> (i32, i32) {
    %c0_i32 = arith.constant 0 : i32
    %c0_i32_0 = arith.constant 0 : i32
    %c0_i32_1 = arith.constant 0 : i32
    return %c0_i32, %c0_i32_0 : i32, i32
  }
  func.func @transform_3(%arg0: i32) -> (i32, i32) {
    %c0_i32 = arith.constant 0 : i32
    %c0_i32_0 = arith.constant 0 : i32
    %c0_i32_1 = arith.constant 0 : i32
    return %c0_i32, %c0_i32_0 : i32, i32
  }
  func.func @transform_4(%arg0: i32) -> (i32, i32) {
    %c0_i32 = arith.constant 0 : i32
    %c0_i32_0 = arith.constant 0 : i32
    %c0_i32_1 = arith.constant 0 : i32
    return %c0_i32, %c0_i32_0 : i32, i32
  }
  func.func @transform_5(%arg0: i32) -> (i32, i32) {
    %c0_i32 = arith.constant 0 : i32
    %c0_i32_0 = arith.constant 0 : i32
    %c0_i32_1 = arith.constant 0 : i32
    return %c0_i32, %c0_i32_0 : i32, i32
  }
  func.func @transform_6(%arg0: i32) -> (i32, i32) {
    %c0_i32 = arith.constant 0 : i32
    %c0_i32_0 = arith.constant 0 : i32
    %c0_i32_1 = arith.constant 0 : i32
    return %c0_i32, %c0_i32_0 : i32, i32
  }
  func.func @transform_7(%arg0: i32) -> (i32, i32) {
    %c0_i32 = arith.constant 0 : i32
    %c0_i32_0 = arith.constant 0 : i32
    %c0_i32_1 = arith.constant 0 : i32
    return %c0_i32, %c0_i32_0 : i32, i32
  }
  func.func @transform_8(%arg0: i32) -> (i32, i32) {
    %c0_i32 = arith.constant 0 : i32
    %c0_i32_0 = arith.constant 0 : i32
    %c0_i32_1 = arith.constant 0 : i32
    return %c0_i32, %c0_i32_0 : i32, i32
  }
  func.func @transform_9(%arg0: i32) -> (i32, i32) {
    %c0_i32 = arith.constant 0 : i32
    %c0_i32_0 = arith.constant 0 : i32
    return %arg0, %c0_i32 : i32, i32
  }
  func.func @transform_10(%arg0: i32) -> (i32, i32) {
    %c0_i32 = arith.constant 0 : i32
    %c0_i32_0 = arith.constant 0 : i32
    return %arg0, %c0_i32 : i32, i32
  }
  func.func @transform_11(%arg0: i32) -> (i32, i32) {
    %c0_i32 = arith.constant 0 : i32
    %c0_i32_0 = arith.constant 0 : i32
    return %arg0, %c0_i32 : i32, i32
  }
}

module attributes {stable_mosaic.version = 11 : i64} {
  func.func @_vae_kernel(%arg0: i32, %arg1: memref<8x896xbf16, #tpu.memory_space<vmem>>, %arg2: memref<896x128xbf16, #tpu.memory_space<vmem>>, %arg3: memref<1x128xf32, #tpu.memory_space<vmem>>, %arg4: memref<128x256xbf16, #tpu.memory_space<vmem>>, %arg5: memref<1x256xf32, #tpu.memory_space<vmem>>, %arg6: memref<128x128xbf16, #tpu.memory_space<vmem>>, %arg7: memref<1x128xf32, #tpu.memory_space<vmem>>, %arg8: memref<128x896xbf16, #tpu.memory_space<vmem>>, %arg9: memref<1x896xf32, #tpu.memory_space<vmem>>, %arg10: memref<8x128xf32, #tpu.memory_space<vmem>>, %arg11: memref<8x896xf32, #tpu.memory_space<vmem>>, %arg12: memref<8x256xf32, #tpu.memory_space<vmem>>) attributes {dimension_semantics = [#tpu.dimension_semantics<parallel>], iteration_bounds = array<i64: 1>, scalar_prefetch = 0 : i64, scratch_operands = 0 : i64, tpu.core_type = #tpu.core_type<tc>, window_params = [{transform_indices = @transform_0, window_bounds = array<i64: 8, 896>}, {pipeline_mode = #tpu.pipeline_mode<synchronous>, transform_indices = @transform_1, window_bounds = array<i64: 896, 128>}, {pipeline_mode = #tpu.pipeline_mode<synchronous>, transform_indices = @transform_2, window_bounds = array<i64: 1, 128>}, {pipeline_mode = #tpu.pipeline_mode<synchronous>, transform_indices = @transform_3, window_bounds = array<i64: 128, 256>}, {pipeline_mode = #tpu.pipeline_mode<synchronous>, transform_indices = @transform_4, window_bounds = array<i64: 1, 256>}, {pipeline_mode = #tpu.pipeline_mode<synchronous>, transform_indices = @transform_5, window_bounds = array<i64: 128, 128>}, {pipeline_mode = #tpu.pipeline_mode<synchronous>, transform_indices = @transform_6, window_bounds = array<i64: 1, 128>}, {pipeline_mode = #tpu.pipeline_mode<synchronous>, transform_indices = @transform_7, window_bounds = array<i64: 128, 896>}, {pipeline_mode = #tpu.pipeline_mode<synchronous>, transform_indices = @transform_8, window_bounds = array<i64: 1, 896>}, {transform_indices = @transform_9, window_bounds = array<i64: 8, 128>}, {transform_indices = @transform_10, window_bounds = array<i64: 8, 896>}, {transform_indices = @transform_11, window_bounds = array<i64: 8, 256>}]} {
    %c0 = arith.constant 0 : index
    %c0_0 = arith.constant 0 : index
    %0 = vector.load %arg1[%c0, %c0_0] : memref<8x896xbf16, #tpu.memory_space<vmem>>, vector<8x896xbf16>
    %c0_1 = arith.constant 0 : index
    %c0_2 = arith.constant 0 : index
    %1 = vector.load %arg2[%c0_1, %c0_2] : memref<896x128xbf16, #tpu.memory_space<vmem>>, vector<896x128xbf16>
    %cst = arith.constant dense<0.000000e+00> : vector<8x128xf32>
    %2 = tpu.matmul %0, %1, %cst {dimension_numbers = #tpu.dot_dimension_numbers<[1], [0], [0], [1], [0, 0, 1, 1], [], []>} : vector<8x896xbf16>, vector<896x128xbf16>, vector<8x128xf32> -> vector<8x128xf32>
    %c0_3 = arith.constant 0 : index
    %c0_4 = arith.constant 0 : index
    %3 = vector.load %arg3[%c0_3, %c0_4] : memref<1x128xf32, #tpu.memory_space<vmem>>, vector<1x128xf32>
    %4 = vector.broadcast %3 : vector<1x128xf32> to vector<8x128xf32>
    %5 = arith.addf %2, %4 : vector<8x128xf32>
    %6 = math.tanh %5 : vector<8x128xf32>
    %c0_5 = arith.constant 0 : index
    %c0_6 = arith.constant 0 : index
    %7 = vector.load %arg4[%c0_5, %c0_6] : memref<128x256xbf16, #tpu.memory_space<vmem>>, vector<128x256xbf16>
    %8 = arith.truncf %6 : vector<8x128xf32> to vector<8x128xbf16>
    %cst_7 = arith.constant dense<0.000000e+00> : vector<8x256xf32>
    %9 = tpu.matmul %8, %7, %cst_7 {dimension_numbers = #tpu.dot_dimension_numbers<[1], [0], [0], [1], [0, 0, 1, 1], [], []>} : vector<8x128xbf16>, vector<128x256xbf16>, vector<8x256xf32> -> vector<8x256xf32>
    %c0_8 = arith.constant 0 : index
    %c0_9 = arith.constant 0 : index
    %10 = vector.load %arg5[%c0_8, %c0_9] : memref<1x256xf32, #tpu.memory_space<vmem>>, vector<1x256xf32>
    %11 = vector.broadcast %10 : vector<1x256xf32> to vector<8x256xf32>
    %12 = arith.addf %9, %11 : vector<8x256xf32>
    %13 = vector.extract_strided_slice %12 {offsets = [0, 0], sizes = [8, 128], strides = [1, 1]} : vector<8x256xf32> to vector<8x128xf32>
    %14 = vector.extract_strided_slice %12 {offsets = [0, 128], sizes = [8, 128], strides = [1, 1]} : vector<8x256xf32> to vector<8x128xf32>
    %cst_10 = arith.constant 5.000000e-01 : f32
    %15 = vector.broadcast %cst_10 : f32 to vector<8x128xf32>
    %16 = arith.mulf %15, %14 : vector<8x128xf32>
    %17 = math.exp %16 : vector<8x128xf32>
    %c0_11 = arith.constant 0 : index
    %c0_12 = arith.constant 0 : index
    %18 = vector.load %arg10[%c0_11, %c0_12] : memref<8x128xf32, #tpu.memory_space<vmem>>, vector<8x128xf32>
    %19 = arith.mulf %17, %18 : vector<8x128xf32>
    %20 = arith.addf %13, %19 : vector<8x128xf32>
    %c0_13 = arith.constant 0 : index
    %c0_14 = arith.constant 0 : index
    %21 = vector.load %arg6[%c0_13, %c0_14] : memref<128x128xbf16, #tpu.memory_space<vmem>>, vector<128x128xbf16>
    %22 = arith.truncf %20 : vector<8x128xf32> to vector<8x128xbf16>
    %cst_15 = arith.constant dense<0.000000e+00> : vector<8x128xf32>
    %23 = tpu.matmul %22, %21, %cst_15 {dimension_numbers = #tpu.dot_dimension_numbers<[1], [0], [0], [1], [0, 0, 1, 1], [], []>} : vector<8x128xbf16>, vector<128x128xbf16>, vector<8x128xf32> -> vector<8x128xf32>
    %c0_16 = arith.constant 0 : index
    %c0_17 = arith.constant 0 : index
    %24 = vector.load %arg7[%c0_16, %c0_17] : memref<1x128xf32, #tpu.memory_space<vmem>>, vector<1x128xf32>
    %25 = vector.broadcast %24 : vector<1x128xf32> to vector<8x128xf32>
    %26 = arith.addf %23, %25 : vector<8x128xf32>
    %27 = math.tanh %26 : vector<8x128xf32>
    %c0_18 = arith.constant 0 : index
    %c0_19 = arith.constant 0 : index
    %28 = vector.load %arg8[%c0_18, %c0_19] : memref<128x896xbf16, #tpu.memory_space<vmem>>, vector<128x896xbf16>
    %29 = arith.truncf %27 : vector<8x128xf32> to vector<8x128xbf16>
    %cst_20 = arith.constant dense<0.000000e+00> : vector<8x896xf32>
    %30 = tpu.matmul %29, %28, %cst_20 {dimension_numbers = #tpu.dot_dimension_numbers<[1], [0], [0], [1], [0, 0, 1, 1], [], []>} : vector<8x128xbf16>, vector<128x896xbf16>, vector<8x896xf32> -> vector<8x896xf32>
    %c0_21 = arith.constant 0 : index
    %c0_22 = arith.constant 0 : index
    %31 = vector.load %arg9[%c0_21, %c0_22] : memref<1x896xf32, #tpu.memory_space<vmem>>, vector<1x896xf32>
    %32 = vector.broadcast %31 : vector<1x896xf32> to vector<8x896xf32>
    %33 = arith.addf %30, %32 : vector<8x896xf32>
    %cst_23 = arith.constant 5.000000e-01 : f32
    %34 = vector.broadcast %cst_23 : f32 to vector<8x896xf32>
    %35 = arith.mulf %34, %33 : vector<8x896xf32>
    %36 = math.tanh %35 : vector<8x896xf32>
    %cst_24 = arith.constant 1.000000e+00 : f32
    %37 = vector.broadcast %cst_24 : f32 to vector<8x896xf32>
    %38 = arith.addf %36, %37 : vector<8x896xf32>
    %cst_25 = arith.constant 5.000000e-01 : f32
    %39 = vector.broadcast %cst_25 : f32 to vector<8x896xf32>
    %40 = arith.mulf %39, %38 : vector<8x896xf32>
    %c0_26 = arith.constant 0 : index
    %c0_27 = arith.constant 0 : index
    %41 = vector.load %arg11[%c0_26, %c0_27] : memref<8x896xf32, #tpu.memory_space<vmem>>, vector<8x896xf32>
    tpu.vector_store %arg11[%c0_26, %c0_27], %40 {strides = array<i32>} : memref<8x896xf32, #tpu.memory_space<vmem>>, vector<8x896xf32>,
    %c0_28 = arith.constant 0 : index
    %c0_29 = arith.constant 0 : index
    %42 = vector.load %arg12[%c0_28, %c0_29] : memref<8x256xf32, #tpu.memory_space<vmem>>, vector<8x256xf32>
    tpu.vector_store %arg12[%c0_28, %c0_29], %12 {strides = array<i32>} : memref<8x256xf32, #tpu.memory_space<vmem>>, vector<8x256xf32>,
    return
  }
  func.func @transform_0(%arg0: i32) -> (i32, i32) {
    %c0_i32 = arith.constant 0 : i32
    %c0_i32_0 = arith.constant 0 : i32
    return %arg0, %c0_i32 : i32, i32
  }
  func.func @transform_1(%arg0: i32) -> (i32, i32) {
    %c0_i32 = arith.constant 0 : i32
    %c0_i32_0 = arith.constant 0 : i32
    %c0_i32_1 = arith.constant 0 : i32
    return %c0_i32, %c0_i32_0 : i32, i32
  }
  func.func @transform_2(%arg0: i32) -> (i32, i32) {
    %c0_i32 = arith.constant 0 : i32
    %c0_i32_0 = arith.constant 0 : i32
    %c0_i32_1 = arith.constant 0 : i32
    return %c0_i32, %c0_i32_0 : i32, i32
  }
  func.func @transform_3(%arg0: i32) -> (i32, i32) {
    %c0_i32 = arith.constant 0 : i32
    %c0_i32_0 = arith.constant 0 : i32
    %c0_i32_1 = arith.constant 0 : i32
    return %c0_i32, %c0_i32_0 : i32, i32
  }
  func.func @transform_4(%arg0: i32) -> (i32, i32) {
    %c0_i32 = arith.constant 0 : i32
    %c0_i32_0 = arith.constant 0 : i32
    %c0_i32_1 = arith.constant 0 : i32
    return %c0_i32, %c0_i32_0 : i32, i32
  }
  func.func @transform_5(%arg0: i32) -> (i32, i32) {
    %c0_i32 = arith.constant 0 : i32
    %c0_i32_0 = arith.constant 0 : i32
    %c0_i32_1 = arith.constant 0 : i32
    return %c0_i32, %c0_i32_0 : i32, i32
  }
  func.func @transform_6(%arg0: i32) -> (i32, i32) {
    %c0_i32 = arith.constant 0 : i32
    %c0_i32_0 = arith.constant 0 : i32
    %c0_i32_1 = arith.constant 0 : i32
    return %c0_i32, %c0_i32_0 : i32, i32
  }
  func.func @transform_7(%arg0: i32) -> (i32, i32) {
    %c0_i32 = arith.constant 0 : i32
    %c0_i32_0 = arith.constant 0 : i32
    %c0_i32_1 = arith.constant 0 : i32
    return %c0_i32, %c0_i32_0 : i32, i32
  }
  func.func @transform_8(%arg0: i32) -> (i32, i32) {
    %c0_i32 = arith.constant 0 : i32
    %c0_i32_0 = arith.constant 0 : i32
    %c0_i32_1 = arith.constant 0 : i32
    return %c0_i32, %c0_i32_0 : i32, i32
  }
  func.func @transform_9(%arg0: i32) -> (i32, i32) {
    %c0_i32 = arith.constant 0 : i32
    %c0_i32_0 = arith.constant 0 : i32
    return %arg0, %c0_i32 : i32, i32
  }
  func.func @transform_10(%arg0: i32) -> (i32, i32) {
    %c0_i32 = arith.constant 0 : i32
    %c0_i32_0 = arith.constant 0 : i32
    return %arg0, %c0_i32 : i32, i32
  }
  func.func @transform_11(%arg0: i32) -> (i32, i32) {
    %c0_i32 = arith.constant 0 : i32
    %c0_i32_0 = arith.constant 0 : i32
    return %arg0, %c0_i32 : i32, i32
  }
}

</mosaic_0001>

<bundles_post_ra>
// kernel: vae_forward.1
= control target key start
LH: loop header
LB: loop body
LE: loop exit
PB: predicated region body
PF: predicated region fallthrough
CT: control target
= control target key end

     0   :  { %17 = vsyncpa [#allocation3], 0  ;;  %s2506_s0 = inlined_call_operand.vmem [shape: bf16[8,896], index: 0, kind: input, shape index: {}]   ;;  %s2507_s1 = inlined_call_operand.hbm [shape: bf16[896,128], index: 1, kind: input, shape index: {}]   ;;  %s2508_s2 = inlined_call_operand.vmem [shape: f32[1,128], index: 2, kind: input, shape index: {}]   ;;  %s2509_s3 = inlined_call_operand.vmem [shape: bf16[128,256], index: 3, kind: input, shape index: {}]   ;;  %s2510_s4 = inlined_call_operand.hbm [shape: f32[1,256], index: 4, kind: input, shape index: {}]   ;;  %s2511_s5 = inlined_call_operand.vmem [shape: bf16[128,128], index: 5, kind: input, shape index: {}]   ;;  %s2512_s6 = inlined_call_operand.hbm [shape: f32[1,128], index: 6, kind: input, shape index: {}]   ;;  %s2513_s7 = inlined_call_operand.hbm [shape: bf16[128,896], index: 7, kind: input, shape index: {}]   ;;  %s2514_s8 = inlined_call_operand.vmem [shape: f32[1,896], index: 8, kind: input, shape index: {}]   ;;  %s2515_s9 = inlined_call_operand.vmem [shape: f32[8,128], index: 9, kind: input, shape index: {}]   ;;  %s2516_s10 = inlined_call_operand.vmem [shape: f32[8,896], index: 10, kind: output, shape index: {0}]   ;;  %s2517_s11 = inlined_call_operand.vmem [shape: f32[8,256], index: 11, kind: output, shape index: {1}]  }
   0x1   :  { %18 = vsyncpa [#allocation5], 0 }
   0x2   :  { %19 = vsyncpa [#allocation8], 0  ;;  %s2202_s17 = smov [#allocation4]   ;;  %s2203_s19 = smov [#allocation2]  }
   0x3   :  { %s44_s18 = sshll.u32 %s2202_s17, 4  ;;  %s27_s20 = sshll.u32 %s2203_s19, 4  ;;  %s45_s18 = int_to_ptr.vmem [resolvable:$true] %s44_s18  ;;  %s2273_s20 = int_to_ptr.vmem [resolvable:$true] %s27_s20 }
   0x4   :  { %s2108_s23 = scalar_lea.hbm %s2510_s4, 32 }
   0x5   :  { %p2109_p0 = scmp.ne.s32.totalorder %s2510_s4, %s2108_s23  ;;  %p2112_p1 = scmp.lt.u32.totalorder %s2108_s23, %s2510_s4 }
   0x7   :  { %p2114_p2 = pnand %p2112_p1, %p2109_p0 }
   0x9   :  { %2117 = shalt.err (!%p2114_p2)
}
   0xa   :  { %s2118_s28 = scalar_lea.vmem %s45_s18, 32  ;;  %p2123_p4 = scmp.lt.s32.totalorder %s45_s18, %s45_s18 }
   0xb   :  { %p2119_p3 = scmp.ne.s32.totalorder %s45_s18, %s2118_s28  ;;  %p2124_p5 = scmp.lt.s32.totalorder %s2118_s28, %s2118_s28 }
   0xd   :  { %p2125_p6 = por %p2124_p5, %p2123_p4 }
   0xf   :  { %p2126_p7 = pnand %p2125_p6, %p2119_p3 }
  0x11   :  { %2129 = shalt.err (!%p2126_p7)
}
  0x12   :  { %47 = dma.hbm_to_vmem [thread:$0]  %s2510_s4, 32, %s45_s18, [#allocation5]  }
  0x13   :  { %s2130_s14 = scalar_lea.hbm %s2507_s1, 7168 }
  0x14   :  { %p2131_p8 = scmp.ne.s32.totalorder %s2507_s1, %s2130_s14  ;;  %p2134_p9 = scmp.lt.u32.totalorder %s2130_s14, %s2507_s1 }
  0x16   :  { %p2136_p10 = pnand %p2134_p9, %p2131_p8 }
  0x18   :  { %2139 = shalt.err (!%p2136_p10)
}
  0x19   :  { %s2140_s21 = scalar_lea.vmem %s2273_s20, 7168  ;;  %p2145_p12 = scmp.lt.s32.totalorder %s2273_s20, %s2273_s20 }
  0x1a   :  { %p2141_p11 = scmp.ne.s32.totalorder %s2273_s20, %s2140_s21  ;;  %p2146_p13 = scmp.lt.s32.totalorder %s2140_s21, %s2140_s21 }
  0x1c   :  { %p2147_p0 = por %p2146_p13, %p2145_p12 }
  0x1e   :  { %p2148_p1 = pnand %p2147_p0, %p2141_p11 }
  0x20   :  { %2151 = shalt.err (!%p2148_p1)
}
  0x21   :  { %s2204_s4 = smov 64   ;;  %s2205_s18 = smov 4  }
  0x22   :  { %33 = dma.hbm_to_vmem [thread:$0]  %s2507_s1, 7168, %s2273_s20, [#allocation3], %s2204_s4, %s2204_s4, %s2205_s18  }
  0x23   :  { %s2206_s24 = smov [#allocation6]   ;;  %s2207_s26 = smov [#allocation7]  }
  0x24   :  { %s56_s25 = sshll.u32 %s2206_s24, 4  ;;  %s65_s27 = sshll.u32 %s2207_s26, 4  ;;  %s57_s25 = int_to_ptr.vmem [resolvable:$true] %s56_s25  ;;  %s2304_s27 = int_to_ptr.vmem [resolvable:$true] %s65_s27 }
  0x25   :  { %s2152_s30 = scalar_lea.hbm %s2512_s6, 16 }
  0x26   :  { %p2153_p2 = scmp.ne.s32.totalorder %s2512_s6, %s2152_s30  ;;  %p2156_p3 = scmp.lt.u32.totalorder %s2152_s30, %s2512_s6 }
  0x28   :  { %p2158_p4 = pnand %p2156_p3, %p2153_p2 }
  0x2a   :  { %2161 = shalt.err (!%p2158_p4)
}
  0x2b   :  { %s2162_s1 = scalar_lea.vmem %s57_s25, 16  ;;  %s2166_s20 = scalar_lea.vmem %s57_s25, 32 }
  0x2c   :  { %p2163_p5 = scmp.ne.s32.totalorder %s57_s25, %s2162_s1  ;;  %p2167_p6 = scmp.lt.s32.totalorder %s57_s25, %s57_s25 }
  0x2d   :  { %p2168_p7 = scmp.lt.s32.totalorder %s2166_s20, %s2162_s1 }
  0x2f   :  { %p2169_p8 = por %p2168_p7, %p2167_p6 }
  0x31   :  { %p2170_p9 = pnand %p2169_p8, %p2163_p5 }
  0x33   :  { %2173 = shalt.err (!%p2170_p9)
}
  0x34   :  { %59 = dma.hbm_to_vmem [thread:$0]  %s2512_s6, 16, %s57_s25, [#allocation5]  }
  0x35   :  { %s2174_s4 = scalar_lea.hbm %s2513_s7, 7168 }
  0x36   :  { %p2175_p10 = scmp.ne.s32.totalorder %s2513_s7, %s2174_s4  ;;  %p2178_p11 = scmp.lt.u32.totalorder %s2174_s4, %s2513_s7 }
  0x38   :  { %p2180_p12 = pnand %p2178_p11, %p2175_p10 }
  0x3a   :  { %2183 = shalt.err (!%p2180_p12)
}
  0x3b   :  { %s2184_s26 = scalar_lea.vmem %s2304_s27, 7168  ;;  %p2189_p0 = scmp.lt.s32.totalorder %s2304_s27, %s2304_s27 }
  0x3c   :  { %p2185_p13 = scmp.ne.s32.totalorder %s2304_s27, %s2184_s26  ;;  %p2190_p1 = scmp.lt.s32.totalorder %s2184_s26, %s2184_s26 }
  0x3e   :  { %p2191_p2 = por %p2190_p1, %p2189_p0 }
  0x40   :  { %p2192_p3 = pnand %p2191_p2, %p2185_p13 }
  0x42   :  { %2195 = shalt.err (!%p2192_p3)
}
  0x43   :  { %s2208_s6 = smov 448   ;;  %s2209_s25 = smov 28  }
  0x44   :  { %71 = dma.hbm_to_vmem [thread:$0]  %s2513_s7, 7168, %s2304_s27, [#allocation8], %s2208_s6, %s2208_s6, %s2209_s25  }
  0x45   :  { %2196 = dma.done.wait [#allocation3], 7168  }
  0x46   :  { %2197 = vsyncadd [#allocation3], 4294960128 }
  0x47   :  { %2198 = dma.done.wait [#allocation5], 48  }
  0x48   :  { %2199 = vsyncadd [#allocation5], 4294967248 }
  0x49   :  { %2200 = dma.done.wait [#allocation8], 7168  }
  0x4a   :  { %2201 = vsyncadd [#allocation8], 4294960128  ;;  %v1913_v0 = vld [vmem:[#allocation2 + $0x40] sm:$0xff]   ;;  %v1917_v4 = vld [vmem:[#allocation2 + $0x48] sm:$0xff]   ;;  %v2210_v42 = vmov 0.0   ;;  %vm2211_vm0 = vmmov 0  }
  0x4b   :  { %v1914_v1 = vld [vmem:[#allocation2] sm:$0xff]   ;;  %1749 = vmatprep.subr.bf16.mxu0 %v1913_v0  ;;  %v1918_v5 = vld [vmem:[#allocation2 + $0x8] sm:$0xff]   ;;  %v1921_v8 = vld [vmem:[#allocation2 + $0x50] sm:$0xff]  }
  0x4c   :  { %v1915_v2 = vld [vmem:[#allocation2 + $0xc0] sm:$0xff]   ;;  %1750 = vmatpush3.bf16.msra.mxu0 %v1914_v1  ;;  %v1919_v6 = vld [vmem:[#allocation2 + $0xc8] sm:$0xff]   ;;  %v1922_v9 = vld [vmem:[#allocation2 + $0x10] sm:$0xff]  }
  0x4d   :  { %v1916_v3 = vld [vmem:[#allocation2 + $0x80] sm:$0xff]   ;;  %1771 = vmatprep.subr.bf16.mxu1 %v1915_v2  ;;  %1751 = vmatprep.subr.bf16.mxu0 %v1917_v4  ;;  %v1920_v7 = vld [vmem:[#allocation2 + $0x88] sm:$0xff]   ;;  %v1923_v10 = vld [vmem:[#allocation2 + $0xd0] sm:$0xff]  }
  0x4e   :  { %1772 = vmatpush3.bf16.msra.mxu1 %v1916_v3  ;;  %v1924_v11 = vld [vmem:[#allocation2 + $0x90] sm:$0xff]   ;;  %v1925_v12 = vld [vmem:[#allocation2 + $0x58] sm:$0xff]   ;;  %v1929_v16 = vld [vmem:[#allocation2 + $0x60] sm:$0xff]  }
  0x4f   :  { %1773 = vmatprep.subr.bf16.mxu1 %v1919_v6  ;;  %v1926_v13 = vld [vmem:[#allocation2 + $0x18] sm:$0xff]   ;;  %v1930_v17 = vld [vmem:[#allocation2 + $0x20] sm:$0xff]   ;;  %v1933_v20 = vld [vmem:[#allocation2 + $0x68] sm:$0xff]  }
  0x50   :  { %1752 = vmatpush3.bf16.msra.mxu0 %v1918_v5  ;;  %v1927_v14 = vld [vmem:[#allocation2 + $0xd8] sm:$0xff]   ;;  %v1931_v18 = vld [vmem:[#allocation2 + $0xe0] sm:$0xff]   ;;  %v1934_v21 = vld [vmem:[#allocation2 + $0x28] sm:$0xff]  }
  0x51   :  { %1753 = vmatprep.subr.bf16.mxu0 %v1921_v8  ;;  %v1928_v15 = vld [vmem:[#allocation2 + $0x98] sm:$0xff]   ;;  %v1932_v19 = vld [vmem:[#allocation2 + $0xa0] sm:$0xff]   ;;  %v1935_v22 = vld [vmem:[#allocation2 + $0xe8] sm:$0xff]  }
  0x52   :  { %1774 = vmatpush3.bf16.msra.mxu1 %v1920_v7  ;;  %v1936_v23 = vld [vmem:[#allocation2 + $0xa8] sm:$0xff]   ;;  %v1937_v24 = vld [vmem:[#allocation2 + $0x70] sm:$0xff]   ;;  %v1941_v28 = vld [vmem:[#allocation2 + $0x78] sm:$0xff]  }
  0x53   :  { %1775 = vmatprep.subr.bf16.mxu1 %v1923_v10  ;;  %v1938_v25 = vld [vmem:[#allocation2 + $0x30] sm:$0xff]   ;;  %v1942_v29 = vld [vmem:[#allocation2 + $0x38] sm:$0xff]   ;;  %v89_v31 = vld [vmem:[%s2506_s0] sm:$0xff] }
  0x54   :  { %1754 = vmatpush3.bf16.msra.mxu0 %v1922_v9  ;;  %v1939_v26 = vld [vmem:[#allocation2 + $0xf0] sm:$0xff]   ;;  %v1943_v30 = vld [vmem:[#allocation2 + $0xf8] sm:$0xff]   ;;  %v1605_v32 = vcombine.low %v89_v31, %v89_v31  ;;  %v1606_v33 = vcombine.high %v89_v31, %v89_v31  ;;  %v1947_v35 = vld [vmem:[#allocation2 + $0x140] sm:$0xff]  }
  0x55   :  { %1755 = vmatprep.subr.bf16.mxu0 %v1925_v12  ;;  %v1940_v27 = vld [vmem:[#allocation2 + $0xb0] sm:$0xff]   ;;  %v1946_v34 = vld [vmem:[#allocation2 + $0xb8] sm:$0xff]   ;;  %v90_v36 = vld [vmem:[%s2506_s0 + $0x8] sm:$0xff] }
  0x56   :  { %1776 = vmatpush3.bf16.msra.mxu1 %v1924_v11  ;;  %605 = vmatprep.mubr.bf16.mxu0 %v1606_v33  ;;  %v1607_v37 = vcombine.low %v90_v36, %v90_v36  ;;  %v1608_v38 = vcombine.high %v90_v36, %v90_v36  ;;  %v1950_v39 = vld [vmem:[#allocation2 + $0x100] sm:$0xff]   ;;  %v1952_v41 = vld [vmem:[#allocation2 + $0x148] sm:$0xff]   ;;  %v1955_v45 = vld [vmem:[#allocation2 + $0x150] sm:$0xff]  }
  0x57   :  { %1777 = vmatprep.subr.bf16.mxu1 %v1927_v14  ;;  %v1951_v40 = vld [vmem:[#allocation2 + $0x180] sm:$0xff]   ;;  %v1953_v43 = vld [vmem:[#allocation2 + $0x108] sm:$0xff]   ;;  %v1956_v46 = vld [vmem:[#allocation2 + $0x110] sm:$0xff]  }
  0x58   :  { %1756 = vmatpush3.bf16.msra.mxu0 %v1926_v13  ;;  %645 = vmatprep.mubr.bf16.mxu1 %v1608_v38  ;;  %v1954_v44 = vld [vmem:[#allocation2 + $0x188] sm:$0xff]   ;;  %v1957_v47 = vld [vmem:[#allocation2 + $0x190] sm:$0xff]   ;;  %v1958_v48 = vld [vmem:[#allocation2 + $0x158] sm:$0xff]  }
  0x59   :  { %1757 = vmatprep.subr.bf16.mxu0 %v1929_v16  ;;  %v1959_v49 = vld [vmem:[#allocation2 + $0x118] sm:$0xff]   ;;  %v1961_v50 = vld [vmem:[#allocation2 + $0x160] sm:$0xff]   ;;  %v1964_v53 = vld [vmem:[#allocation2 + $0x168] sm:$0xff]  }
  0x5a   :  { %1778 = vmatpush3.bf16.msra.mxu1 %v1928_v15  ;;  %v1960_v51 = vld [vmem:[#allocation2 + $0x198] sm:$0xff]   ;;  %v1962_v52 = vld [vmem:[#allocation2 + $0x120] sm:$0xff]   ;;  %v1965_v55 = vld [vmem:[#allocation2 + $0x128] sm:$0xff]  }
  0x5b   :  { %1779 = vmatprep.subr.bf16.mxu1 %v1931_v18  ;;  %v1963_v54 = vld [vmem:[#allocation2 + $0x1a0] sm:$0xff]   ;;  %v1967_v56 = vld [vmem:[#allocation2 + $0x170] sm:$0xff]   ;;  %v1966_v57 = vld [vmem:[#allocation2 + $0x1a8] sm:$0xff]  }
  0x5c   :  { %1758 = vmatpush3.bf16.msra.mxu0 %v1930_v17  ;;  %v1968_v58 = vld [vmem:[#allocation2 + $0x130] sm:$0xff]   ;;  %v1970_v62 = vld [vmem:[#allocation2 + $0x178] sm:$0xff]   ;;  %v1976_v3 = vld [vmem:[%s2509_s3] ss:$8 sps:$4 sm:$0xff]  }
  0x5d   :  { %1759 = vmatprep.subr.bf16.mxu0 %v1933_v20  ;;  %v91_v59 = vld [vmem:[%s2506_s0 + $0x10] sm:$0xff]  ;;  %v1971_v63 = vld [vmem:[#allocation2 + $0x138] sm:$0xff]   ;;  %v1978_v4 = vld [vmem:[%s2509_s3 + $0x4] ss:$8 sps:$4 sm:$0xff]  }
  0x5e   :  { %1780 = vmatpush3.bf16.msra.mxu1 %v1932_v19  ;;  %v1969_v60 = vld [vmem:[#allocation2 + $0x1b0] sm:$0xff]   ;;  %v1610_v61 = vcombine.high %v91_v59, %v91_v59  ;;  %v1974_v0 = vld [vmem:[#allocation2 + $0x1b8] sm:$0xff]   ;;  %v1609_v1 = vcombine.low %v91_v59, %v91_v59  ;;  %v1984_v7 = vld [vmem:[%s2509_s3 + $0x24] ss:$8 sps:$4 sm:$0xff]   ;;  %v2212_v19 = vmov 0  }
  0x5f   :  { %1781 = vmatprep.subr.bf16.mxu1 %v1935_v22  ;;  %v1975_v2 = vld [vmem:[%s2506_s0 + $0x18] ss:$0 sps:$4 sm:$0xff]   ;;  %v1981_v5 = vld [vmem:[%s2509_s3 + $0x14] ss:$8 sps:$4 sm:$0xff]   ;;  %v1982_v8 = vld [vmem:[%s2509_s3 + $0x20] ss:$8 sps:$4 sm:$0xff]  }
  0x60   :  { %1760 = vmatpush3.bf16.msra.mxu0 %v1934_v21  ;;  %v1979_v6 = vld [vmem:[%s2509_s3 + $0x10] ss:$8 sps:$4 sm:$0xff]   ;;  %v1987_v9 = vld [vmem:[%s2509_s3 + $0x34] ss:$8 sps:$4 sm:$0xff]   ;;  %v1990_v11 = vld [vmem:[%s2509_s3 + $0x44] ss:$8 sps:$4 sm:$0xff]  }
  0x61   :  { %1761 = vmatprep.subr.bf16.mxu0 %v1937_v24  ;;  %v1985_v10 = vld [vmem:[%s2509_s3 + $0x30] ss:$8 sps:$4 sm:$0xff]   ;;  %v1988_v12 = vld [vmem:[%s2509_s3 + $0x40] ss:$8 sps:$4 sm:$0xff]   ;;  %v1993_v13 = vld [vmem:[%s2509_s3 + $0x54] ss:$8 sps:$4 sm:$0xff]  }
  0x62   :  { %1782 = vmatpush3.bf16.msra.mxu1 %v1936_v23  ;;  %v1991_v14 = vld [vmem:[%s2509_s3 + $0x50] ss:$8 sps:$4 sm:$0xff]   ;;  %v1996_v15 = vld [vmem:[%s2509_s3 + $0x64] ss:$8 sps:$4 sm:$0xff]   ;;  %v1994_v16 = vld [vmem:[%s2509_s3 + $0x60] ss:$8 sps:$4 sm:$0xff]  }
  0x63   :  { %1783 = vmatprep.subr.bf16.mxu1 %v1939_v26  ;;  %v1999_v17 = vld [vmem:[%s2509_s3 + $0x74] ss:$8 sps:$4 sm:$0xff]   ;;  %v1997_v18 = vld [vmem:[%s2509_s3 + $0x70] ss:$8 sps:$4 sm:$0xff]   ;;  %v2000_v20 = vld [vmem:[%s2511_s5] sm:$0xff]  }
  0x64   :  { %1762 = vmatpush3.bf16.msra.mxu0 %v1938_v25  ;;  %v2001_v21 = vld [vmem:[%s2511_s5 + $0x8] sm:$0xff]   ;;  %v1604_v23 = vld [vmem:[%s2508_s2] ss:$0 sm:$0xff]  ;;  %v2014_v59 = vld [vmem:[#allocation7 + $0x38] ss:$28 sps:$4 sm:$0xff]  }
  0x65   :  { %1763 = vmatprep.subr.bf16.mxu0 %v1941_v28 }
  0x66   :  { %1784 = vmatpush3.bf16.msra.mxu1 %v1940_v27 }
  0x67   :  { %1785 = vmatprep.subr.bf16.mxu1 %v1943_v30 }
  0x68   :  { %1764 = vmatpush3.bf16.msra.mxu0 %v1942_v29 }
  0x69   :  { %1793 = vmatprep.subr.bf16.mxu0 %v1947_v35 }
  0x6a   :  { %1786 = vmatpush3.bf16.msra.mxu1 %v1946_v34 }
  0x6b   :  { %606 = vmatmul.mubr.bf16.vlgmr.msra.gmra.mrb[0].mxu0 %v1605_v32  ;;  %1842 = vmatprep.subr.bf16.mxu1 %v2210_v42 }
  0x6c   :  { %1794 = vmatpush3.bf16.msra.mxu0 %v1950_v39  ;;  %685 = vmatprep.mubr.bf16.mxu0 %v1610_v61  ;;  %v2020_v61 = vld [vmem:[#allocation7 + $0x70] ss:$28 sps:$4 sm:$0xff]  }
  0x6d   :  { %646 = vmatmul.mubr.bf16.vlgmr.msra.gmra.mrb[0].mxu1 %v1607_v37  ;;  %1795 = vmatprep.subr.bf16.mxu0 %v1952_v41 }
  0x6e   :  { %1843 = vmatpush3.bf16.msra.mxu1 %v1951_v40  ;;  %1858 = vmatprep.mubr.msk.bf16.mxu1 %vm2211_vm0, %v2210_v42 }
  0x6f   :  { %1844 = vmatprep.subr.bf16.mxu1 %v2210_v42 }
  0x70   :  { %1796 = vmatpush3.bf16.msra.mxu0 %v1953_v43 }
  0x71   :  { %1797 = vmatprep.subr.bf16.mxu0 %v1955_v45 }
  0x72   :  { %1845 = vmatpush3.bf16.msra.mxu1 %v1954_v44 }
  0x73   :  { %1846 = vmatprep.subr.bf16.mxu1 %v2210_v42 }
  0x74   :  { %1798 = vmatpush3.bf16.msra.mxu0 %v1956_v46 }
  0x75   :  { %1799 = vmatprep.subr.bf16.mxu0 %v1958_v48 }
  0x76   :  { %1847 = vmatpush3.bf16.msra.mxu1 %v1957_v47 }
  0x77   :  { %1848 = vmatprep.subr.bf16.mxu1 %v2210_v42 }
  0x78   :  { %1800 = vmatpush3.bf16.msra.mxu0 %v1959_v49  ;;  %v2002_v49 = vld [vmem:[%s2511_s5 + $0x10] sm:$0xff]  }
  0x79   :  { %1801 = vmatprep.subr.bf16.mxu0 %v1961_v50  ;;  %v2003_v50 = vld [vmem:[%s2511_s5 + $0x18] sm:$0xff]  }
  0x7a   :  { %1849 = vmatpush3.bf16.msra.mxu1 %v1960_v51  ;;  %v2004_v51 = vld [vmem:[%s2511_s5 + $0x20] sm:$0xff]  }
  0x7b   :  { %1850 = vmatprep.subr.bf16.mxu1 %v2210_v42 }
  0x7c   :  { %1802 = vmatpush3.bf16.msra.mxu0 %v1962_v52  ;;  %v2005_v52 = vld [vmem:[%s2511_s5 + $0x28] sm:$0xff]  }
  0x7d   :  { %1803 = vmatprep.subr.bf16.mxu0 %v1964_v53  ;;  %v2006_v53 = vld [vmem:[%s2511_s5 + $0x30] sm:$0xff]  }
  0x7e   :  { %1851 = vmatpush3.bf16.msra.mxu1 %v1963_v54  ;;  %v2007_v54 = vld [vmem:[%s2511_s5 + $0x38] sm:$0xff]  }
  0x7f   :  { %1852 = vmatprep.subr.bf16.mxu1 %v2210_v42 }
  0x80   :  { %1804 = vmatpush3.bf16.msra.mxu0 %v1965_v55  ;;  %v2008_v55 = vld [vmem:[#allocation7] ss:$28 sps:$4 sm:$0xff]  }
  0x81   :  { %1805 = vmatprep.subr.bf16.mxu0 %v1967_v56  ;;  %v2010_v56 = vld [vmem:[#allocation7 + $0x4] ss:$28 sps:$4 sm:$0xff]  }
  0x82   :  { %1853 = vmatpush3.bf16.msra.mxu1 %v1966_v57  ;;  %v2013_v57 = vld [vmem:[#allocation7 + $0xc] ss:$28 sps:$4 sm:$0xff]  }
  0x83   :  { %1854 = vmatprep.subr.bf16.mxu1 %v2210_v42 }
  0x84   :  { %1806 = vmatpush3.bf16.msra.mxu0 %v1968_v58  ;;  %v2016_v58 = vld [vmem:[#allocation7 + $0x3c] ss:$28 sps:$4 sm:$0xff]  }
  0x85   :  { %1807 = vmatprep.subr.bf16.mxu0 %v1970_v62  ;;  %v2028_v62 = vld [vmem:[#allocation7 + $0xac] ss:$28 sps:$4 sm:$0xff]  }
  0x86   :  { %1855 = vmatpush3.bf16.msra.mxu1 %v1969_v60  ;;  %v2022_v60 = vld [vmem:[#allocation7 + $0x74] ss:$28 sps:$4 sm:$0xff]  }
  0x87   :  { %1856 = vmatprep.subr.bf16.mxu1 %v2210_v42 }
  0x88   :  { %1808 = vmatpush3.bf16.msra.mxu0 %v1971_v63  ;;  %v2026_v63 = vld [vmem:[#allocation7 + $0xa8] ss:$28 sps:$4 sm:$0xff]  }
  0x89   :  { %843 = vmatprep.subr.bf16.mxu0 %v1978_v4 }
  0x8a   :  { %1857 = vmatpush3.bf16.msra.mxu1 %v1974_v0  ;;  %v2034_v0 = vld [vmem:[#allocation7 + $0xe4] ss:$28 sps:$4 sm:$0xff]  }
  0x8b   :  { %686 = vmatmul.mubr.bf16.vlgmr.msra.gmra.mrb[4].mxu0 %v1609_v1  ;;  %1862 = vmatprep.subr.bf16.mxu1 %v2210_v42  ;;  %v2032_v1 = vld [vmem:[#allocation7 + $0xe0] ss:$28 sps:$4 sm:$0xff]  }
  0x8c   :  { %844 = vmatpush1.bf16.msra.mxu0 %v1976_v3  ;;  %875 = vmatprep.mubr.bf16.mxu0 %v2212_v19 }
  0x8d   :  { %1859 = vmatmul.mubr.bf16.vlgmr.msra.gmra.mrb[4].mxu1 %v1975_v2  ;;  %845 = vmatprep.subr.bf16.mxu0 %v1981_v5  ;;  %v753_v2 = vlaneseq  ;;  %v751_v5 = vld [vmem:[#allocation4] sm:$0x3] }
  0x8e   :  { %1878 = vmatprep.mubr.msk.bf16.mxu1 %vm2211_vm0, %v2210_v42  ;;  %1863 = vmatpush3.bf16.msra.mxu1 %v2000_v20 }
  0x8f   :  { %1864 = vmatprep.subr.bf16.mxu1 %v2210_v42  ;;  %v2444_v3 = vshrl.u32 %v753_v2, 7  ;;  %v2075_v2 = vld [vmem:[#allocation7 + $0xf8] ss:$28 sps:$4 sm:$0xff]  }
  0x90   :  { %846 = vmatpush1.bf16.msra.mxu0 %v1979_v6 }
  0x91   :  { %847 = vmatprep.subr.bf16.mxu0 %v1984_v7  ;;  %v755_v4 = vsub.s32 0, %v2444_v3  ;;  %v759_v6 = vsub.s32 1, %v2444_v3 }
  0x92   :  { %1865 = vmatpush3.bf16.msra.mxu1 %v2001_v21 }
  0x93   :  { %1866 = vmatprep.subr.bf16.mxu1 %v2210_v42  ;;  %v756_v7 = vrot.slane %v751_v5, %v755_v4 }
  0x94   :  { %848 = vmatpush1.bf16.msra.mxu0 %v1982_v8  ;;  %v760_v8 = vrot.slane %v751_v5, %v759_v6  ;;  %v2078_v5 = vld [vmem:[#allocation7 + $0x12c] ss:$28 sps:$4 sm:$0xff]  }
  0x95   :  { %849 = vmatprep.subr.bf16.mxu0 %v1987_v9 }
  0x96   :  { %1867 = vmatpush3.bf16.msra.mxu1 %v2002_v49 }
  0x97   :  { %1868 = vmatprep.subr.bf16.mxu1 %v2210_v42 }
  0x98   :  { %850 = vmatpush1.bf16.msra.mxu0 %v1985_v10 }
  0x99   :  { %851 = vmatprep.subr.bf16.mxu0 %v1990_v11 }
  0x9a   :  { %1869 = vmatpush3.bf16.msra.mxu1 %v2003_v50 }
  0x9b   :  { %1870 = vmatprep.subr.bf16.mxu1 %v2210_v42 }
  0x9c   :  { %852 = vmatpush1.bf16.msra.mxu0 %v1988_v12 }
  0x9d   :  { %853 = vmatprep.subr.bf16.mxu0 %v1993_v13 }
  0x9e   :  { %1871 = vmatpush3.bf16.msra.mxu1 %v2004_v51 }
  0x9f   :  { %1872 = vmatprep.subr.bf16.mxu1 %v2210_v42 }
  0xa0   :  { %854 = vmatpush1.bf16.msra.mxu0 %v1991_v14 }
  0xa1   :  { %855 = vmatprep.subr.bf16.mxu0 %v1996_v15 }
  0xa2   :  { %1873 = vmatpush3.bf16.msra.mxu1 %v2005_v52 }
  0xa3   :  { %1874 = vmatprep.subr.bf16.mxu1 %v2210_v42 }
  0xa4   :  { %856 = vmatpush1.bf16.msra.mxu0 %v1994_v16 }
  0xa5   :  { %857 = vmatprep.subr.bf16.mxu0 %v1999_v17  ;;  %v887_v17 = vld [vmem:[%s2515_s9] sm:$0xff] }
  0xa6   :  { %1875 = vmatpush3.bf16.msra.mxu1 %v2006_v53  ;;  %v2056_v53 = vld [vmem:[#allocation7 + $0x10] ss:$28 sps:$4 sm:$0xff]  }
  0xa7   :  { %1876 = vmatprep.subr.bf16.mxu1 %v2210_v42 }
  0xa8   :  { %858 = vmatpush1.bf16.msra.mxu0 %v1997_v18 }
  0xa9   :  { %1393 = vmatprep.subr.bf16.mxu0 %v2010_v56  ;;  %v2062_v56 = vld [vmem:[#allocation7 + $0x4c] ss:$28 sps:$4 sm:$0xff]  }
  0xaa   :  { %1877 = vmatpush3.bf16.msra.mxu1 %v2007_v54  ;;  %v2059_v54 = vld [vmem:[#allocation7 + $0x18] ss:$28 sps:$4 sm:$0xff]  }
  0xab   :  { %1434 = vmatprep.subr.bf16.mxu1 %v2013_v57  ;;  %v2060_v57 = vld [vmem:[#allocation7 + $0x48] ss:$28 sps:$4 sm:$0xff]  }
 0x13e   :  { %v1765_v22 = vpop.f32.mrb[0].mxu0 }
 0x13f   :  { %v1766_v24 = vpop.f32.mrb[1].mxu0 }
 0x140   :  { %v1767_v25 = vadd.f32 %v1766_v24, %v1765_v22  ;;  %v1768_v26 = vpop.f32.mrb[2].mxu0  ;;  %v1787_v27 = vpop.f32.mrb[0].mxu1  ;;  %v2011_v22 = vld [vmem:[#allocation7 + $0x8] ss:$28 sps:$4 sm:$0xff]  }
 0x141   :  { %v1769_v28 = vpop.f32.mrb[3].mxu0  ;;  %v1788_v29 = vpop.f32.mrb[1].mxu1  ;;  %v2019_v24 = vld [vmem:[#allocation7 + $0x44] ss:$28 sps:$4 sm:$0xff]   ;;  %v2025_v26 = vld [vmem:[#allocation7 + $0x7c] ss:$28 sps:$4 sm:$0xff]  }
 0x142   :  { %v608_v30 = vadd.f32 %v1767_v25, %v1604_v23  ;;  %v1789_v31 = vadd.f32 %v1788_v29, %v1787_v27  ;;  %v1790_v32 = vpop.f32.mrb[2].mxu1  ;;  %v2017_v25 = vld [vmem:[#allocation7 + $0x40] ss:$28 sps:$4 sm:$0xff]   ;;  %v2023_v27 = vld [vmem:[#allocation7 + $0x78] ss:$28 sps:$4 sm:$0xff]  }
 0x143   :  { %v1791_v33 = vpop.f32.mrb[3].mxu1  ;;  %v2031_v28 = vld [vmem:[#allocation7 + $0xb4] ss:$28 sps:$4 sm:$0xff]   ;;  %v2040_v32 = vld [vmem:[#allocation7 + $0x11c] ss:$28 sps:$4 sm:$0xff]  }
 0x144   :  { %v648_v34 = vadd.f32 %v1789_v31, %v608_v30  ;;  %v2029_v29 = vld [vmem:[#allocation7 + $0xb0] ss:$28 sps:$4 sm:$0xff]   ;;  %v2035_v31 = vld [vmem:[#allocation7 + $0xe8] ss:$28 sps:$4 sm:$0xff]  }
 0x145   :  { %v2037_v30 = vld [vmem:[#allocation7 + $0xec] ss:$28 sps:$4 sm:$0xff]   ;;  %v2043_v33 = vld [vmem:[#allocation7 + $0x124] ss:$28 sps:$4 sm:$0xff]  }
 0x15e   :  { %v1809_v35 = vpop.f32.mrb[4].mxu0 }
 0x15f   :  { %v1810_v36 = vpop.f32.mrb[5].mxu0 }
 0x160   :  { %v1811_v37 = vadd.f32 %v1810_v36, %v1809_v35  ;;  %v1812_v38 = vpop.f32.mrb[6].mxu0  ;;  %v727_v39 = vpop.f32.mrb[4].mxu1  ;;  %v2041_v35 = vld [vmem:[#allocation7 + $0x120] ss:$28 sps:$4 sm:$0xff]   ;;  %v2046_v36 = vld [vmem:[#allocation7 + $0x154] ss:$28 sps:$4 sm:$0xff]  }
 0x161   :  { %v1813_v40 = vpop.f32.mrb[7].mxu0  ;;  %v1860_v41 = vpop.f32.mrb[5].mxu1  ;;  %v2044_v38 = vld [vmem:[#allocation7 + $0x150] ss:$28 sps:$4 sm:$0xff]  }
 0x162   :  { %v688_v43 = vadd.f32 %v1811_v37, %v648_v34  ;;  %v730_v44 = vpop.f32.mrb[6].mxu1  ;;  %v2038_v34 = vld [vmem:[#allocation7 + $0x118] ss:$28 sps:$4 sm:$0xff]   ;;  %v2052_v40 = vld [vmem:[#allocation7 + $0x18c] ss:$28 sps:$4 sm:$0xff]  }
 0x163   :  { %v1861_v45 = vpop.f32.mrb[7].mxu1  ;;  %v2049_v37 = vld [vmem:[#allocation7 + $0x15c] ss:$28 sps:$4 sm:$0xff]   ;;  %v2055_v41 = vld [vmem:[#allocation7 + $0x194] ss:$28 sps:$4 sm:$0xff]  }
 0x164   :  { %v728_v46 = vadd.f32 %v727_v39, %v688_v43  ;;  %v2047_v39 = vld [vmem:[#allocation7 + $0x158] ss:$28 sps:$4 sm:$0xff]   ;;  %v2050_v43 = vld [vmem:[#allocation7 + $0x188] ss:$28 sps:$4 sm:$0xff]   ;;  %v2053_v44 = vld [vmem:[#allocation7 + $0x190] ss:$28 sps:$4 sm:$0xff]  }
 0x165   :  { %v2058_v45 = vld [vmem:[#allocation7 + $0x14] ss:$28 sps:$4 sm:$0xff]  }
 0x166   :  { %2088 = vtanh.f32 %v728_v46  ;;  %v1684_v46 = vld [vmem:[#allocation6] ss:$0 sm:$0xff] }
 0x170   :  { %v2089_v47 = vpop.eup %2088 }
 0x171   :  { %v750_v48 = vpack.c.bf16 %v2089_v47, %v2089_v47 }
 0x173   :  { %876 = vmatmul.mubr.bf16.vlgmr.msra.gmra.mrb[8].mxu0 %v750_v48 }
 0x174   :  { %1425 = vmatprep.mubr.bf16.mxu0 %v2212_v19  ;;  %1394 = vmatpush1.bf16.msra.mxu0 %v2008_v55 }
 0x175   :  { %1395 = vmatprep.subr.bf16.mxu0 %v2016_v58  ;;  %v2063_v58 = vld [vmem:[#allocation7 + $0x50] ss:$28 sps:$4 sm:$0xff]  }
 0x178   :  { %1396 = vmatpush1.bf16.msra.mxu0 %v2014_v59  ;;  %v2066_v59 = vld [vmem:[#allocation7 + $0x84] ss:$28 sps:$4 sm:$0xff]  }
 0x179   :  { %1397 = vmatprep.subr.bf16.mxu0 %v2022_v60  ;;  %v2064_v60 = vld [vmem:[#allocation7 + $0x80] ss:$28 sps:$4 sm:$0xff]  }
 0x17c   :  { %1398 = vmatpush1.bf16.msra.mxu0 %v2020_v61  ;;  %v2067_v61 = vld [vmem:[#allocation7 + $0x88] ss:$28 sps:$4 sm:$0xff]  }
 0x17d   :  { %1399 = vmatprep.subr.bf16.mxu0 %v2028_v62  ;;  %v2070_v62 = vld [vmem:[#allocation7 + $0xbc] ss:$28 sps:$4 sm:$0xff]  }
 0x180   :  { %1400 = vmatpush1.bf16.msra.mxu0 %v2026_v63  ;;  %v2068_v63 = vld [vmem:[#allocation7 + $0xb8] ss:$28 sps:$4 sm:$0xff]  }
 0x181   :  { %1401 = vmatprep.subr.bf16.mxu0 %v2034_v0  ;;  %v2071_v0 = vld [vmem:[#allocation7 + $0xc0] ss:$28 sps:$4 sm:$0xff]  }
 0x184   :  { %1402 = vmatpush1.bf16.msra.mxu0 %v2032_v1  ;;  %v2074_v1 = vld [vmem:[#allocation7 + $0xf4] ss:$28 sps:$4 sm:$0xff]  }
 0x185   :  { %1403 = vmatprep.subr.bf16.mxu0 %v2040_v32 }
 0x188   :  { %1404 = vmatpush1.bf16.msra.mxu0 %v2038_v34 }
 0x189   :  { %1405 = vmatprep.subr.bf16.mxu0 %v2046_v36 }
 0x18c   :  { %1406 = vmatpush1.bf16.msra.mxu0 %v2044_v38 }
 0x18d   :  { %1407 = vmatprep.subr.bf16.mxu0 %v2052_v40 }
 0x190   :  { %1408 = vmatpush1.bf16.msra.mxu0 %v2050_v43 }
 0x191   :  { %1475 = vmatprep.subr.bf16.mxu0 %v2058_v45 }
 0x246   :  { %v877_v9 = vpop.f32.mrb[8].mxu0 }
 0x247   :  { %v878_v10 = vadd.f32 %v877_v9, %v756_v7  ;;  %v879_v11 = vpop.f32.mrb[9].mxu0  ;;  %v2076_v7 = vld [vmem:[#allocation7 + $0x128] ss:$28 sps:$4 sm:$0xff]  }
 0x248   :  { %v880_v12 = vadd.f32 %v879_v11, %v760_v8  ;;  %v881_v13 = vpop.f32.mrb[10].mxu0  ;;  %v2079_v8 = vld [vmem:[#allocation7 + $0x130] ss:$28 sps:$4 sm:$0xff]   ;;  %v2082_v9 = vld [vmem:[#allocation7 + $0x164] ss:$28 sps:$4 sm:$0xff]  }
 0x249   :  { %1591 = vst [vmem:[%s2517_s11] sm:$0xff] %v878_v10  ;;  %v882_v14 = vpop.f32.mrb[11].mxu0  ;;  %v2083_v11 = vld [vmem:[#allocation7 + $0x168] ss:$28 sps:$4 sm:$0xff]   ;;  %v2084_v13 = vld [vmem:[#allocation7 + $0x198] ss:$28 sps:$4 sm:$0xff]  }
 0x24a   :  { %v884_v15 = vmul.f32 0.5, %v880_v12  ;;  %1592 = vst [vmem:[%s2517_s11 + $0x8] sm:$0xff] %v880_v12  ;;  %v2086_v12 = vld [vmem:[#allocation7 + $0x19c] ss:$28 sps:$4 sm:$0xff]  }
 0x24b   :  { %v2087_v14 = vld [vmem:[#allocation7 + $0x1a0] ss:$28 sps:$4 sm:$0xff]  }
 0x24c   :  { %v885_v16 = vmul.f32 1.442695, %v884_v15  ;;  %v1080_v15 = vsub.s32 2, %v2444_v3 }
 0x24e   :  { %2090 = vpow2.f32 %v885_v16  ;;  %v1068_v16 = vld [vmem:[%s2514_s8] sm:$0xff] }
 0x258   :  { %v2091_v18 = vpop.eup %2090 }
 0x259   :  { %v888_v20 = vmul.f32 %v2091_v18, %v887_v17  ;;  %v1084_v17 = vsub.s32 3, %v2444_v3  ;;  %v1073_v18 = vrot.slane %v1068_v16, %v755_v4 }
 0x25b   :  { %v889_v21 = vadd.f32 %v888_v20, %v878_v10  ;;  %v2080_v10 = vld [vmem:[#allocation7 + $0x160] ss:$28 sps:$4 sm:$0xff]   ;;  %v1081_v20 = vrot.slane %v1068_v16, %v1080_v15 }
 0x25d   :  { %v906_v23 = vpack.c.bf16 %v889_v21, %v889_v21  ;;  %v1077_v21 = vrot.slane %v1068_v16, %v759_v6 }
 0x25f   :  { %1879 = vmatmul.mubr.bf16.vlgmr.msra.gmra.mrb[8].mxu1 %v906_v23 }
 0x260   :  { %1435 = vmatpush1.bf16.msra.mxu1 %v2011_v22  ;;  %1466 = vmatprep.mubr.bf16.mxu1 %v2212_v19 }
 0x261   :  { %1436 = vmatprep.subr.bf16.mxu1 %v2019_v24 }
 0x264   :  { %1437 = vmatpush1.bf16.msra.mxu1 %v2017_v25 }
 0x265   :  { %1438 = vmatprep.subr.bf16.mxu1 %v2025_v26 }
 0x268   :  { %1439 = vmatpush1.bf16.msra.mxu1 %v2023_v27 }
 0x269   :  { %1440 = vmatprep.subr.bf16.mxu1 %v2031_v28 }
 0x26c   :  { %1441 = vmatpush1.bf16.msra.mxu1 %v2029_v29 }
 0x26d   :  { %1442 = vmatprep.subr.bf16.mxu1 %v2037_v30 }
 0x270   :  { %1443 = vmatpush1.bf16.msra.mxu1 %v2035_v31 }
 0x271   :  { %1444 = vmatprep.subr.bf16.mxu1 %v2043_v33 }
 0x274   :  { %1445 = vmatpush1.bf16.msra.mxu1 %v2041_v35 }
 0x275   :  { %1446 = vmatprep.subr.bf16.mxu1 %v2049_v37 }
 0x278   :  { %1447 = vmatpush1.bf16.msra.mxu1 %v2047_v39 }
 0x279   :  { %1448 = vmatprep.subr.bf16.mxu1 %v2055_v41 }
 0x27c   :  { %1449 = vmatpush1.bf16.msra.mxu1 %v2053_v44 }
 0x27d   :  { %1882 = vmatprep.subr.bf16.mxu1 %v2210_v42 }
 0x332   :  { %v996_v47 = vpop.f32.mrb[8].mxu1 }
 0x333   :  { %v997_v48 = vadd.f32 %v1684_v46, %v996_v47  ;;  %v1880_v49 = vpop.f32.mrb[9].mxu1 }
 0x334   :  { %v999_v50 = vpop.f32.mrb[10].mxu1  ;;  %v1088_v49 = vsub.s32 4, %v2444_v3 }
 0x335   :  { %2092 = vtanh.f32 %v997_v48  ;;  %v1881_v51 = vpop.f32.mrb[11].mxu1  ;;  %v1096_v50 = vsub.s32 6, %v2444_v3 }
 0x336   :  { %v1092_v51 = vsub.s32 5, %v2444_v3 }
 0x33f   :  { %v2093_v52 = vpop.eup %2092 }
 0x340   :  { %v1067_v55 = vpack.c.bf16 %v2093_v52, %v2093_v52  ;;  %v1089_v52 = vrot.slane %v1068_v16, %v1088_v49 }
 0x342   :  { %1426 = vmatmul.mubr.bf16.vlgmr.msra.gmra.mrb[12].mxu0 %v1067_v55  ;;  %1467 = vmatmul.mubr.bf16.vlgmr.msra.gmra.mrb[12].mxu1 %v1067_v55 }
 0x343   :  { %1476 = vmatpush1.bf16.msra.mxu0 %v2056_v53  ;;  %1883 = vmatpush3.bf16.msra.mxu1 %v2059_v54  ;;  %v1097_v53 = vrot.slane %v1068_v16, %v1096_v50  ;;  %v1093_v54 = vrot.slane %v1068_v16, %v1092_v51 }
 0x344   :  { %1477 = vmatprep.subr.bf16.mxu0 %v2062_v56  ;;  %1884 = vmatprep.subr.bf16.mxu1 %v2210_v42 }
 0x345   :  { %1507 = vmatprep.mubr.bf16.mxu0 %v2212_v19  ;;  %1898 = vmatprep.mubr.msk.bf16.mxu1 %vm2211_vm0, %v2210_v42  ;;  %v2072_v19 = vld [vmem:[#allocation7 + $0xf0] ss:$28 sps:$4 sm:$0xff]  }
 0x347   :  { %1478 = vmatpush1.bf16.msra.mxu0 %v2060_v57  ;;  %1885 = vmatpush3.bf16.msra.mxu1 %v2063_v58 }
 0x348   :  { %1479 = vmatprep.subr.bf16.mxu0 %v2066_v59  ;;  %1886 = vmatprep.subr.bf16.mxu1 %v2210_v42 }
 0x34b   :  { %1480 = vmatpush1.bf16.msra.mxu0 %v2064_v60  ;;  %1887 = vmatpush3.bf16.msra.mxu1 %v2067_v61 }
 0x34c   :  { %1481 = vmatprep.subr.bf16.mxu0 %v2070_v62  ;;  %1888 = vmatprep.subr.bf16.mxu1 %v2210_v42 }
 0x34f   :  { %1482 = vmatpush1.bf16.msra.mxu0 %v2068_v63  ;;  %1889 = vmatpush3.bf16.msra.mxu1 %v2071_v0 }
 0x350   :  { %1483 = vmatprep.subr.bf16.mxu0 %v2074_v1  ;;  %1890 = vmatprep.subr.bf16.mxu1 %v2210_v42 }
 0x353   :  { %1484 = vmatpush1.bf16.msra.mxu0 %v2072_v19  ;;  %1891 = vmatpush3.bf16.msra.mxu1 %v2075_v2 }
 0x354   :  { %1485 = vmatprep.subr.bf16.mxu0 %v2078_v5  ;;  %1892 = vmatprep.subr.bf16.mxu1 %v2210_v42 }
 0x357   :  { %1486 = vmatpush1.bf16.msra.mxu0 %v2076_v7  ;;  %1893 = vmatpush3.bf16.msra.mxu1 %v2079_v8 }
 0x358   :  { %1487 = vmatprep.subr.bf16.mxu0 %v2082_v9  ;;  %1894 = vmatprep.subr.bf16.mxu1 %v2210_v42 }
 0x35b   :  { %1488 = vmatpush1.bf16.msra.mxu0 %v2080_v10  ;;  %1895 = vmatpush3.bf16.msra.mxu1 %v2083_v11 }
 0x35c   :  { %1489 = vmatprep.subr.bf16.mxu0 %v2086_v12  ;;  %1896 = vmatprep.subr.bf16.mxu1 %v2210_v42  ;;  %v1085_v42 = vrot.slane %v1068_v16, %v1084_v17 }
 0x35f   :  { %1490 = vmatpush1.bf16.msra.mxu0 %v2084_v13  ;;  %1897 = vmatpush3.bf16.msra.mxu1 %v2087_v14 }
 0x362   :  { %1508 = vmatmul.mubr.bf16.vlgmr.msra.gmra.mrb[16].mxu0 %v1067_v55  ;;  %1899 = vmatmul.mubr.bf16.vlgmr.msra.gmra.mrb[16].mxu1 %v1067_v55 }
 0x415   :  { %v1427_v22 = vpop.f32.mrb[12].mxu0  ;;  %v1468_v23 = vpop.f32.mrb[12].mxu1 }
 0x416   :  { %v1428_v24 = vadd.f32 %v1427_v22, %v1073_v18  ;;  %v1469_v25 = vadd.f32 %v1468_v23, %v1081_v20  ;;  %v1429_v26 = vpop.f32.mrb[13].mxu0  ;;  %v1470_v27 = vpop.f32.mrb[13].mxu1 }
 0x417   :  { %v1430_v28 = vadd.f32 %v1429_v26, %v1077_v21  ;;  %v1471_v29 = vadd.f32 %v1470_v27, %v1085_v42  ;;  %v1431_v30 = vpop.f32.mrb[14].mxu0  ;;  %v1472_v31 = vpop.f32.mrb[14].mxu1 }
 0x418   :  { %v1556_v32 = vmul.f32 0.5, %v1428_v24  ;;  %v1558_v33 = vmul.f32 0.5, %v1469_v25  ;;  %v1432_v34 = vpop.f32.mrb[15].mxu0  ;;  %v1473_v35 = vpop.f32.mrb[15].mxu1 }
 0x419   :  { %v1557_v4 = vmul.f32 0.5, %v1430_v28  ;;  %v1559_v36 = vmul.f32 0.5, %v1471_v29 }
 0x41a   :  { %2094 = vtanh.f32 %v1556_v32 }
 0x41b   :  { %2096 = vtanh.f32 %v1558_v33 }
 0x41c   :  { %2098 = vtanh.f32 %v1557_v4 }
 0x41d   :  { %2100 = vtanh.f32 %v1559_v36 }
 0x424   :  { %v2095_v6 = vpop.eup %2094 }
 0x425   :  { %v2097_v37 = vpop.eup %2096  ;;  %v1570_v38 = vadd.f32 1.0, %v2095_v6 }
 0x426   :  { %v2099_v39 = vpop.eup %2098  ;;  %v1572_v40 = vadd.f32 1.0, %v2097_v37 }
 0x427   :  { %v2101_v41 = vpop.eup %2100  ;;  %v1577_v43 = vmul.f32 0.5, %v1570_v38  ;;  %v1571_v44 = vadd.f32 1.0, %v2099_v39 }
 0x428   :  { %v1579_v45 = vmul.f32 0.5, %v1572_v40  ;;  %v1573_v46 = vadd.f32 1.0, %v2101_v41 }
 0x429   :  { %1584 = vst [vmem:[%s2516_s10] sm:$0xff] %v1577_v43  ;;  %v1578_v47 = vmul.f32 0.5, %v1571_v44 }
 0x42a   :  { %1586 = vst [vmem:[%s2516_s10 + $0x10] sm:$0xff] %v1579_v45  ;;  %v1580_v48 = vmul.f32 0.5, %v1573_v46 }
 0x42b   :  { %1585 = vst [vmem:[%s2516_s10 + $0x8] sm:$0xff] %v1578_v47 }
 0x42c   :  { %1587 = vst [vmem:[%s2516_s10 + $0x18] sm:$0xff] %v1580_v48 }
 0x435   :  { %v1509_v55 = vpop.f32.mrb[16].mxu0  ;;  %v1550_v56 = vpop.f32.mrb[16].mxu1 }
 0x436   :  { %v1510_v57 = vadd.f32 %v1509_v55, %v1089_v52  ;;  %v1551_v58 = vadd.f32 %v1550_v56, %v1097_v53  ;;  %v1511_v59 = vpop.f32.mrb[17].mxu0  ;;  %v1900_v60 = vpop.f32.mrb[17].mxu1 }
 0x437   :  { %v1512_v61 = vadd.f32 %v1511_v59, %v1093_v54  ;;  %v1513_v62 = vpop.f32.mrb[18].mxu0  ;;  %v1553_v63 = vpop.f32.mrb[18].mxu1 }
 0x438   :  { %v1560_v0 = vmul.f32 0.5, %v1510_v57  ;;  %v1562_v1 = vmul.f32 0.5, %v1551_v58  ;;  %v1514_v19 = vpop.f32.mrb[19].mxu0  ;;  %v1901_v2 = vpop.f32.mrb[19].mxu1 }
 0x439   :  { %v1561_v5 = vmul.f32 0.5, %v1512_v61 }
 0x43a   :  { %2102 = vtanh.f32 %v1560_v0 }
 0x43b   :  { %2104 = vtanh.f32 %v1562_v1 }
 0x43c   :  { %2106 = vtanh.f32 %v1561_v5 }
 0x444   :  { %v2103_v3 = vpop.eup %2102 }
 0x445   :  { %v2105_v7 = vpop.eup %2104  ;;  %v1574_v8 = vadd.f32 1.0, %v2103_v3 }
 0x446   :  { %v2107_v9 = vpop.eup %2106  ;;  %v1576_v10 = vadd.f32 1.0, %v2105_v7 }
 0x447   :  { %v1581_v11 = vmul.f32 0.5, %v1574_v8  ;;  %v1575_v12 = vadd.f32 1.0, %v2107_v9 }
 0x448   :  { %v1583_v13 = vmul.f32 0.5, %v1576_v10 }
 0x449   :  { %1588 = vst [vmem:[%s2516_s10 + $0x20] sm:$0xff] %v1581_v11  ;;  %v1582_v14 = vmul.f32 0.5, %v1575_v12 }
 0x44a   :  { %1590 = vst [vmem:[%s2516_s10 + $0x30] sm:$0xff] %v1583_v13 }
 0x44b   :  { %1589 = vst [vmem:[%s2516_s10 + $0x28] sm:$0xff] %v1582_v14 }
 0x44c   :  { %1601 = vsyncpa [#allocation3], 1 }
 0x44d   :  { %1602 = vsyncpa [#allocation5], 1 }
 0x44e   :  { %1603 = vsyncpa [#allocation8], 1 }

// kernel: vae_forward.1
= control target key start
LH: loop header
LB: loop body
LE: loop exit
PB: predicated region body
PF: predicated region fallthrough
CT: control target
= control target key end

     0   :  { %17 = vsyncpa [#allocation3], 0  ;;  %s2506_s0 = inlined_call_operand.vmem [shape: bf16[8,896], index: 0, kind: input, shape index: {}]   ;;  %s2507_s1 = inlined_call_operand.hbm [shape: bf16[896,128], index: 1, kind: input, shape index: {}]   ;;  %s2508_s2 = inlined_call_operand.vmem [shape: f32[1,128], index: 2, kind: input, shape index: {}]   ;;  %s2509_s3 = inlined_call_operand.vmem [shape: bf16[128,256], index: 3, kind: input, shape index: {}]   ;;  %s2510_s4 = inlined_call_operand.hbm [shape: f32[1,256], index: 4, kind: input, shape index: {}]   ;;  %s2511_s5 = inlined_call_operand.vmem [shape: bf16[128,128], index: 5, kind: input, shape index: {}]   ;;  %s2512_s6 = inlined_call_operand.hbm [shape: f32[1,128], index: 6, kind: input, shape index: {}]   ;;  %s2513_s7 = inlined_call_operand.hbm [shape: bf16[128,896], index: 7, kind: input, shape index: {}]   ;;  %s2514_s8 = inlined_call_operand.vmem [shape: f32[1,896], index: 8, kind: input, shape index: {}]   ;;  %s2515_s9 = inlined_call_operand.vmem [shape: f32[8,128], index: 9, kind: input, shape index: {}]   ;;  %s2516_s10 = inlined_call_operand.vmem [shape: f32[8,896], index: 10, kind: output, shape index: {0}]   ;;  %s2517_s11 = inlined_call_operand.vmem [shape: f32[8,256], index: 11, kind: output, shape index: {1}]  }
   0x1   :  { %18 = vsyncpa [#allocation5], 0 }
   0x2   :  { %19 = vsyncpa [#allocation8], 0  ;;  %s2202_s17 = smov [#allocation4]   ;;  %s2203_s19 = smov [#allocation2]  }
   0x3   :  { %s44_s18 = sshll.u32 %s2202_s17, 4  ;;  %s27_s20 = sshll.u32 %s2203_s19, 4  ;;  %s45_s18 = int_to_ptr.vmem [resolvable:$true] %s44_s18  ;;  %s2273_s20 = int_to_ptr.vmem [resolvable:$true] %s27_s20 }
   0x4   :  { %s2108_s23 = scalar_lea.hbm %s2510_s4, 32 }
   0x5   :  { %p2109_p0 = scmp.ne.s32.totalorder %s2510_s4, %s2108_s23  ;;  %p2112_p1 = scmp.lt.u32.totalorder %s2108_s23, %s2510_s4 }
   0x7   :  { %p2114_p2 = pnand %p2112_p1, %p2109_p0 }
   0x9   :  { %2117 = shalt.err (!%p2114_p2)
}
   0xa   :  { %s2118_s28 = scalar_lea.vmem %s45_s18, 32  ;;  %p2123_p4 = scmp.lt.s32.totalorder %s45_s18, %s45_s18 }
   0xb   :  { %p2119_p3 = scmp.ne.s32.totalorder %s45_s18, %s2118_s28  ;;  %p2124_p5 = scmp.lt.s32.totalorder %s2118_s28, %s2118_s28 }
   0xd   :  { %p2125_p6 = por %p2124_p5, %p2123_p4 }
   0xf   :  { %p2126_p7 = pnand %p2125_p6, %p2119_p3 }
  0x11   :  { %2129 = shalt.err (!%p2126_p7)
}
  0x12   :  { %47 = dma.hbm_to_vmem [thread:$0]  %s2510_s4, 32, %s45_s18, [#allocation5]  }
  0x13   :  { %s2130_s14 = scalar_lea.hbm %s2507_s1, 7168 }
  0x14   :  { %p2131_p8 = scmp.ne.s32.totalorder %s2507_s1, %s2130_s14  ;;  %p2134_p9 = scmp.lt.u32.totalorder %s2130_s14, %s2507_s1 }
  0x16   :  { %p2136_p10 = pnand %p2134_p9, %p2131_p8 }
  0x18   :  { %2139 = shalt.err (!%p2136_p10)
}
  0x19   :  { %s2140_s21 = scalar_lea.vmem %s2273_s20, 7168  ;;  %p2145_p12 = scmp.lt.s32.totalorder %s2273_s20, %s2273_s20 }
  0x1a   :  { %p2141_p11 = scmp.ne.s32.totalorder %s2273_s20, %s2140_s21  ;;  %p2146_p13 = scmp.lt.s32.totalorder %s2140_s21, %s2140_s21 }
  0x1c   :  { %p2147_p0 = por %p2146_p13, %p2145_p12 }
  0x1e   :  { %p2148_p1 = pnand %p2147_p0, %p2141_p11 }
  0x20   :  { %2151 = shalt.err (!%p2148_p1)
}
  0x21   :  { %s2204_s4 = smov 64   ;;  %s2205_s18 = smov 4  }
  0x22   :  { %33 = dma.hbm_to_vmem [thread:$0]  %s2507_s1, 7168, %s2273_s20, [#allocation3], %s2204_s4, %s2204_s4, %s2205_s18  }
  0x23   :  { %s2206_s24 = smov [#allocation6]   ;;  %s2207_s26 = smov [#allocation7]  }
  0x24   :  { %s56_s25 = sshll.u32 %s2206_s24, 4  ;;  %s65_s27 = sshll.u32 %s2207_s26, 4  ;;  %s57_s25 = int_to_ptr.vmem [resolvable:$true] %s56_s25  ;;  %s2304_s27 = int_to_ptr.vmem [resolvable:$true] %s65_s27 }
  0x25   :  { %s2152_s30 = scalar_lea.hbm %s2512_s6, 16 }
  0x26   :  { %p2153_p2 = scmp.ne.s32.totalorder %s2512_s6, %s2152_s30  ;;  %p2156_p3 = scmp.lt.u32.totalorder %s2152_s30, %s2512_s6 }
  0x28   :  { %p2158_p4 = pnand %p2156_p3, %p2153_p2 }
  0x2a   :  { %2161 = shalt.err (!%p2158_p4)
}
  0x2b   :  { %s2162_s1 = scalar_lea.vmem %s57_s25, 16  ;;  %s2166_s20 = scalar_lea.vmem %s57_s25, 32 }
  0x2c   :  { %p2163_p5 = scmp.ne.s32.totalorder %s57_s25, %s2162_s1  ;;  %p2167_p6 = scmp.lt.s32.totalorder %s57_s25, %s57_s25 }
  0x2d   :  { %p2168_p7 = scmp.lt.s32.totalorder %s2166_s20, %s2162_s1 }
  0x2f   :  { %p2169_p8 = por %p2168_p7, %p2167_p6 }
  0x31   :  { %p2170_p9 = pnand %p2169_p8, %p2163_p5 }
  0x33   :  { %2173 = shalt.err (!%p2170_p9)
}
  0x34   :  { %59 = dma.hbm_to_vmem [thread:$0]  %s2512_s6, 16, %s57_s25, [#allocation5]  }
  0x35   :  { %s2174_s4 = scalar_lea.hbm %s2513_s7, 7168 }
  0x36   :  { %p2175_p10 = scmp.ne.s32.totalorder %s2513_s7, %s2174_s4  ;;  %p2178_p11 = scmp.lt.u32.totalorder %s2174_s4, %s2513_s7 }
  0x38   :  { %p2180_p12 = pnand %p2178_p11, %p2175_p10 }
  0x3a   :  { %2183 = shalt.err (!%p2180_p12)
}
  0x3b   :  { %s2184_s26 = scalar_lea.vmem %s2304_s27, 7168  ;;  %p2189_p0 = scmp.lt.s32.totalorder %s2304_s27, %s2304_s27 }
  0x3c   :  { %p2185_p13 = scmp.ne.s32.totalorder %s2304_s27, %s2184_s26  ;;  %p2190_p1 = scmp.lt.s32.totalorder %s2184_s26, %s2184_s26 }
  0x3e   :  { %p2191_p2 = por %p2190_p1, %p2189_p0 }
  0x40   :  { %p2192_p3 = pnand %p2191_p2, %p2185_p13 }
  0x42   :  { %2195 = shalt.err (!%p2192_p3)
}
  0x43   :  { %s2208_s6 = smov 448   ;;  %s2209_s25 = smov 28  }
  0x44   :  { %71 = dma.hbm_to_vmem [thread:$0]  %s2513_s7, 7168, %s2304_s27, [#allocation8], %s2208_s6, %s2208_s6, %s2209_s25  }
  0x45   :  { %2196 = dma.done.wait [#allocation3], 7168  }
  0x46   :  { %2197 = vsyncadd [#allocation3], 4294960128 }
  0x47   :  { %2198 = dma.done.wait [#allocation5], 48  }
  0x48   :  { %2199 = vsyncadd [#allocation5], 4294967248 }
  0x49   :  { %2200 = dma.done.wait [#allocation8], 7168  }
  0x4a   :  { %2201 = vsyncadd [#allocation8], 4294960128  ;;  %v1913_v0 = vld [vmem:[#allocation2 + $0x40] sm:$0xff]   ;;  %v1917_v4 = vld [vmem:[#allocation2 + $0x48] sm:$0xff]   ;;  %v2210_v42 = vmov 0.0   ;;  %vm2211_vm0 = vmmov 0  }
  0x4b   :  { %v1914_v1 = vld [vmem:[#allocation2] sm:$0xff]   ;;  %1749 = vmatprep.subr.bf16.mxu0 %v1913_v0  ;;  %v1918_v5 = vld [vmem:[#allocation2 + $0x8] sm:$0xff]   ;;  %v1921_v8 = vld [vmem:[#allocation2 + $0x50] sm:$0xff]  }
  0x4c   :  { %v1915_v2 = vld [vmem:[#allocation2 + $0xc0] sm:$0xff]   ;;  %1750 = vmatpush3.bf16.msra.mxu0 %v1914_v1  ;;  %v1919_v6 = vld [vmem:[#allocation2 + $0xc8] sm:$0xff]   ;;  %v1922_v9 = vld [vmem:[#allocation2 + $0x10] sm:$0xff]  }
  0x4d   :  { %v1916_v3 = vld [vmem:[#allocation2 + $0x80] sm:$0xff]   ;;  %1771 = vmatprep.subr.bf16.mxu1 %v1915_v2  ;;  %1751 = vmatprep.subr.bf16.mxu0 %v1917_v4  ;;  %v1920_v7 = vld [vmem:[#allocation2 + $0x88] sm:$0xff]   ;;  %v1923_v10 = vld [vmem:[#allocation2 + $0xd0] sm:$0xff]  }
  0x4e   :  { %1772 = vmatpush3.bf16.msra.mxu1 %v1916_v3  ;;  %v1924_v11 = vld [vmem:[#allocation2 + $0x90] sm:$0xff]   ;;  %v1925_v12 = vld [vmem:[#allocation2 + $0x58] sm:$0xff]   ;;  %v1929_v16 = vld [vmem:[#allocation2 + $0x60] sm:$0xff]  }
  0x4f   :  { %1773 = vmatprep.subr.bf16.mxu1 %v1919_v6  ;;  %v1926_v13 = vld [vmem:[#allocation2 + $0x18] sm:$0xff]   ;;  %v1930_v17 = vld [vmem:[#allocation2 + $0x20] sm:$0xff]   ;;  %v1933_v20 = vld [vmem:[#allocation2 + $0x68] sm:$0xff]  }
  0x50   :  { %1752 = vmatpush3.bf16.msra.mxu0 %v1918_v5  ;;  %v1927_v14 = vld [vmem:[#allocation2 + $0xd8] sm:$0xff]   ;;  %v1931_v18 = vld [vmem:[#allocation2 + $0xe0] sm:$0xff]   ;;  %v1934_v21 = vld [vmem:[#allocation2 + $0x28] sm:$0xff]  }
  0x51   :  { %1753 = vmatprep.subr.bf16.mxu0 %v1921_v8  ;;  %v1928_v15 = vld [vmem:[#allocation2 + $0x98] sm:$0xff]   ;;  %v1932_v19 = vld [vmem:[#allocation2 + $0xa0] sm:$0xff]   ;;  %v1935_v22 = vld [vmem:[#allocation2 + $0xe8] sm:$0xff]  }
  0x52   :  { %1774 = vmatpush3.bf16.msra.mxu1 %v1920_v7  ;;  %v1936_v23 = vld [vmem:[#allocation2 + $0xa8] sm:$0xff]   ;;  %v1937_v24 = vld [vmem:[#allocation2 + $0x70] sm:$0xff]   ;;  %v1941_v28 = vld [vmem:[#allocation2 + $0x78] sm:$0xff]  }
  0x53   :  { %1775 = vmatprep.subr.bf16.mxu1 %v1923_v10  ;;  %v1938_v25 = vld [vmem:[#allocation2 + $0x30] sm:$0xff]   ;;  %v1942_v29 = vld [vmem:[#allocation2 + $0x38] sm:$0xff]   ;;  %v89_v31 = vld [vmem:[%s2506_s0] sm:$0xff] }
  0x54   :  { %1754 = vmatpush3.bf16.msra.mxu0 %v1922_v9  ;;  %v1939_v26 = vld [vmem:[#allocation2 + $0xf0] sm:$0xff]   ;;  %v1943_v30 = vld [vmem:[#allocation2 + $0xf8] sm:$0xff]   ;;  %v1605_v32 = vcombine.low %v89_v31, %v89_v31  ;;  %v1606_v33 = vcombine.high %v89_v31, %v89_v31  ;;  %v1947_v35 = vld [vmem:[#allocation2 + $0x140] sm:$0xff]  }
  0x55   :  { %1755 = vmatprep.subr.bf16.mxu0 %v1925_v12  ;;  %v1940_v27 = vld [vmem:[#allocation2 + $0xb0] sm:$0xff]   ;;  %v1946_v34 = vld [vmem:[#allocation2 + $0xb8] sm:$0xff]   ;;  %v90_v36 = vld [vmem:[%s2506_s0 + $0x8] sm:$0xff] }
  0x56   :  { %1776 = vmatpush3.bf16.msra.mxu1 %v1924_v11  ;;  %605 = vmatprep.mubr.bf16.mxu0 %v1606_v33  ;;  %v1607_v37 = vcombine.low %v90_v36, %v90_v36  ;;  %v1608_v38 = vcombine.high %v90_v36, %v90_v36  ;;  %v1950_v39 = vld [vmem:[#allocation2 + $0x100] sm:$0xff]   ;;  %v1952_v41 = vld [vmem:[#allocation2 + $0x148] sm:$0xff]   ;;  %v1955_v45 = vld [vmem:[#allocation2 + $0x150] sm:$0xff]  }
  0x57   :  { %1777 = vmatprep.subr.bf16.mxu1 %v1927_v14  ;;  %v1951_v40 = vld [vmem:[#allocation2 + $0x180] sm:$0xff]   ;;  %v1953_v43 = vld [vmem:[#allocation2 + $0x108] sm:$0xff]   ;;  %v1956_v46 = vld [vmem:[#allocation2 + $0x110] sm:$0xff]  }
  0x58   :  { %1756 = vmatpush3.bf16.msra.mxu0 %v1926_v13  ;;  %645 = vmatprep.mubr.bf16.mxu1 %v1608_v38  ;;  %v1954_v44 = vld [vmem:[#allocation2 + $0x188] sm:$0xff]   ;;  %v1957_v47 = vld [vmem:[#allocation2 + $0x190] sm:$0xff]   ;;  %v1958_v48 = vld [vmem:[#allocation2 + $0x158] sm:$0xff]  }
  0x59   :  { %1757 = vmatprep.subr.bf16.mxu0 %v1929_v16  ;;  %v1959_v49 = vld [vmem:[#allocation2 + $0x118] sm:$0xff]   ;;  %v1961_v50 = vld [vmem:[#allocation2 + $0x160] sm:$0xff]   ;;  %v1964_v53 = vld [vmem:[#allocation2 + $0x168] sm:$0xff]  }
  0x5a   :  { %1778 = vmatpush3.bf16.msra.mxu1 %v1928_v15  ;;  %v1960_v51 = vld [vmem:[#allocation2 + $0x198] sm:$0xff]   ;;  %v1962_v52 = vld [vmem:[#allocation2 + $0x120] sm:$0xff]   ;;  %v1965_v55 = vld [vmem:[#allocation2 + $0x128] sm:$0xff]  }
  0x5b   :  { %1779 = vmatprep.subr.bf16.mxu1 %v1931_v18  ;;  %v1963_v54 = vld [vmem:[#allocation2 + $0x1a0] sm:$0xff]   ;;  %v1967_v56 = vld [vmem:[#allocation2 + $0x170] sm:$0xff]   ;;  %v1966_v57 = vld [vmem:[#allocation2 + $0x1a8] sm:$0xff]  }
  0x5c   :  { %1758 = vmatpush3.bf16.msra.mxu0 %v1930_v17  ;;  %v1968_v58 = vld [vmem:[#allocation2 + $0x130] sm:$0xff]   ;;  %v1970_v62 = vld [vmem:[#allocation2 + $0x178] sm:$0xff]   ;;  %v1976_v3 = vld [vmem:[%s2509_s3] ss:$8 sps:$4 sm:$0xff]  }
  0x5d   :  { %1759 = vmatprep.subr.bf16.mxu0 %v1933_v20  ;;  %v91_v59 = vld [vmem:[%s2506_s0 + $0x10] sm:$0xff]  ;;  %v1971_v63 = vld [vmem:[#allocation2 + $0x138] sm:$0xff]   ;;  %v1978_v4 = vld [vmem:[%s2509_s3 + $0x4] ss:$8 sps:$4 sm:$0xff]  }
  0x5e   :  { %1780 = vmatpush3.bf16.msra.mxu1 %v1932_v19  ;;  %v1969_v60 = vld [vmem:[#allocation2 + $0x1b0] sm:$0xff]   ;;  %v1610_v61 = vcombine.high %v91_v59, %v91_v59  ;;  %v1974_v0 = vld [vmem:[#allocation2 + $0x1b8] sm:$0xff]   ;;  %v1609_v1 = vcombine.low %v91_v59, %v91_v59  ;;  %v1984_v7 = vld [vmem:[%s2509_s3 + $0x24] ss:$8 sps:$4 sm:$0xff]   ;;  %v2212_v19 = vmov 0  }
  0x5f   :  { %1781 = vmatprep.subr.bf16.mxu1 %v1935_v22  ;;  %v1975_v2 = vld [vmem:[%s2506_s0 + $0x18] ss:$0 sps:$4 sm:$0xff]   ;;  %v1981_v5 = vld [vmem:[%s2509_s3 + $0x14] ss:$8 sps:$4 sm:$0xff]   ;;  %v1982_v8 = vld [vmem:[%s2509_s3 + $0x20] ss:$8 sps:$4 sm:$0xff]  }
  0x60   :  { %1760 = vmatpush3.bf16.msra.mxu0 %v1934_v21  ;;  %v1979_v6 = vld [vmem:[%s2509_s3 + $0x10] ss:$8 sps:$4 sm:$0xff]   ;;  %v1987_v9 = vld [vmem:[%s2509_s3 + $0x34] ss:$8 sps:$4 sm:$0xff]   ;;  %v1990_v11 = vld [vmem:[%s2509_s3 + $0x44] ss:$8 sps:$4 sm:$0xff]  }
  0x61   :  { %1761 = vmatprep.subr.bf16.mxu0 %v1937_v24  ;;  %v1985_v10 = vld [vmem:[%s2509_s3 + $0x30] ss:$8 sps:$4 sm:$0xff]   ;;  %v1988_v12 = vld [vmem:[%s2509_s3 + $0x40] ss:$8 sps:$4 sm:$0xff]   ;;  %v1993_v13 = vld [vmem:[%s2509_s3 + $0x54] ss:$8 sps:$4 sm:$0xff]  }
  0x62   :  { %1782 = vmatpush3.bf16.msra.mxu1 %v1936_v23  ;;  %v1991_v14 = vld [vmem:[%s2509_s3 + $0x50] ss:$8 sps:$4 sm:$0xff]   ;;  %v1996_v15 = vld [vmem:[%s2509_s3 + $0x64] ss:$8 sps:$4 sm:$0xff]   ;;  %v1994_v16 = vld [vmem:[%s2509_s3 + $0x60] ss:$8 sps:$4 sm:$0xff]  }
  0x63   :  { %1783 = vmatprep.subr.bf16.mxu1 %v1939_v26  ;;  %v1999_v17 = vld [vmem:[%s2509_s3 + $0x74] ss:$8 sps:$4 sm:$0xff]   ;;  %v1997_v18 = vld [vmem:[%s2509_s3 + $0x70] ss:$8 sps:$4 sm:$0xff]   ;;  %v2000_v20 = vld [vmem:[%s2511_s5] sm:$0xff]  }
  0x64   :  { %1762 = vmatpush3.bf16.msra.mxu0 %v1938_v25  ;;  %v2001_v21 = vld [vmem:[%s2511_s5 + $0x8] sm:$0xff]   ;;  %v1604_v23 = vld [vmem:[%s2508_s2] ss:$0 sm:$0xff]  ;;  %v2014_v59 = vld [vmem:[#allocation7 + $0x38] ss:$28 sps:$4 sm:$0xff]  }
  0x65   :  { %1763 = vmatprep.subr.bf16.mxu0 %v1941_v28 }
  0x66   :  { %1784 = vmatpush3.bf16.msra.mxu1 %v1940_v27 }
  0x67   :  { %1785 = vmatprep.subr.bf16.mxu1 %v1943_v30 }
  0x68   :  { %1764 = vmatpush3.bf16.msra.mxu0 %v1942_v29 }
  0x69   :  { %1793 = vmatprep.subr.bf16.mxu0 %v1947_v35 }
  0x6a   :  { %1786 = vmatpush3.bf16.msra.mxu1 %v1946_v34 }
  0x6b   :  { %606 = vmatmul.mubr.bf16.vlgmr.msra.gmra.mrb[0].mxu0 %v1605_v32  ;;  %1842 = vmatprep.subr.bf16.mxu1 %v2210_v42 }
  0x6c   :  { %1794 = vmatpush3.bf16.msra.mxu0 %v1950_v39  ;;  %685 = vmatprep.mubr.bf16.mxu0 %v1610_v61  ;;  %v2020_v61 = vld [vmem:[#allocation7 + $0x70] ss:$28 sps:$4 sm:$0xff]  }
  0x6d   :  { %646 = vmatmul.mubr.bf16.vlgmr.msra.gmra.mrb[0].mxu1 %v1607_v37  ;;  %1795 = vmatprep.subr.bf16.mxu0 %v1952_v41 }
  0x6e   :  { %1843 = vmatpush3.bf16.msra.mxu1 %v1951_v40  ;;  %1858 = vmatprep.mubr.msk.bf16.mxu1 %vm2211_vm0, %v2210_v42 }
  0x6f   :  { %1844 = vmatprep.subr.bf16.mxu1 %v2210_v42 }
  0x70   :  { %1796 = vmatpush3.bf16.msra.mxu0 %v1953_v43 }
  0x71   :  { %1797 = vmatprep.subr.bf16.mxu0 %v1955_v45 }
  0x72   :  { %1845 = vmatpush3.bf16.msra.mxu1 %v1954_v44 }
  0x73   :  { %1846 = vmatprep.subr.bf16.mxu1 %v2210_v42 }
  0x74   :  { %1798 = vmatpush3.bf16.msra.mxu0 %v1956_v46 }
  0x75   :  { %1799 = vmatprep.subr.bf16.mxu0 %v1958_v48 }
  0x76   :  { %1847 = vmatpush3.bf16.msra.mxu1 %v1957_v47 }
  0x77   :  { %1848 = vmatprep.subr.bf16.mxu1 %v2210_v42 }
  0x78   :  { %1800 = vmatpush3.bf16.msra.mxu0 %v1959_v49  ;;  %v2002_v49 = vld [vmem:[%s2511_s5 + $0x10] sm:$0xff]  }
  0x79   :  { %1801 = vmatprep.subr.bf16.mxu0 %v1961_v50  ;;  %v2003_v50 = vld [vmem:[%s2511_s5 + $0x18] sm:$0xff]  }
  0x7a   :  { %1849 = vmatpush3.bf16.msra.mxu1 %v1960_v51  ;;  %v2004_v51 = vld [vmem:[%s2511_s5 + $0x20] sm:$0xff]  }
  0x7b   :  { %1850 = vmatprep.subr.bf16.mxu1 %v2210_v42 }
  0x7c   :  { %1802 = vmatpush3.bf16.msra.mxu0 %v1962_v52  ;;  %v2005_v52 = vld [vmem:[%s2511_s5 + $0x28] sm:$0xff]  }
  0x7d   :  { %1803 = vmatprep.subr.bf16.mxu0 %v1964_v53  ;;  %v2006_v53 = vld [vmem:[%s2511_s5 + $0x30] sm:$0xff]  }
  0x7e   :  { %1851 = vmatpush3.bf16.msra.mxu1 %v1963_v54  ;;  %v2007_v54 = vld [vmem:[%s2511_s5 + $0x38] sm:$0xff]  }
  0x7f   :  { %1852 = vmatprep.subr.bf16.mxu1 %v2210_v42 }
  0x80   :  { %1804 = vmatpush3.bf16.msra.mxu0 %v1965_v55  ;;  %v2008_v55 = vld [vmem:[#allocation7] ss:$28 sps:$4 sm:$0xff]  }
  0x81   :  { %1805 = vmatprep.subr.bf16.mxu0 %v1967_v56  ;;  %v2010_v56 = vld [vmem:[#allocation7 + $0x4] ss:$28 sps:$4 sm:$0xff]  }
  0x82   :  { %1853 = vmatpush3.bf16.msra.mxu1 %v1966_v57  ;;  %v2013_v57 = vld [vmem:[#allocation7 + $0xc] ss:$28 sps:$4 sm:$0xff]  }
  0x83   :  { %1854 = vmatprep.subr.bf16.mxu1 %v2210_v42 }
  0x84   :  { %1806 = vmatpush3.bf16.msra.mxu0 %v1968_v58  ;;  %v2016_v58 = vld [vmem:[#allocation7 + $0x3c] ss:$28 sps:$4 sm:$0xff]  }
  0x85   :  { %1807 = vmatprep.subr.bf16.mxu0 %v1970_v62  ;;  %v2028_v62 = vld [vmem:[#allocation7 + $0xac] ss:$28 sps:$4 sm:$0xff]  }
  0x86   :  { %1855 = vmatpush3.bf16.msra.mxu1 %v1969_v60  ;;  %v2022_v60 = vld [vmem:[#allocation7 + $0x74] ss:$28 sps:$4 sm:$0xff]  }
  0x87   :  { %1856 = vmatprep.subr.bf16.mxu1 %v2210_v42 }
  0x88   :  { %1808 = vmatpush3.bf16.msra.mxu0 %v1971_v63  ;;  %v2026_v63 = vld [vmem:[#allocation7 + $0xa8] ss:$28 sps:$4 sm:$0xff]  }
  0x89   :  { %843 = vmatprep.subr.bf16.mxu0 %v1978_v4 }
  0x8a   :  { %1857 = vmatpush3.bf16.msra.mxu1 %v1974_v0  ;;  %v2034_v0 = vld [vmem:[#allocation7 + $0xe4] ss:$28 sps:$4 sm:$0xff]  }
  0x8b   :  { %686 = vmatmul.mubr.bf16.vlgmr.msra.gmra.mrb[4].mxu0 %v1609_v1  ;;  %1862 = vmatprep.subr.bf16.mxu1 %v2210_v42  ;;  %v2032_v1 = vld [vmem:[#allocation7 + $0xe0] ss:$28 sps:$4 sm:$0xff]  }
  0x8c   :  { %844 = vmatpush1.bf16.msra.mxu0 %v1976_v3  ;;  %875 = vmatprep.mubr.bf16.mxu0 %v2212_v19 }
  0x8d   :  { %1859 = vmatmul.mubr.bf16.vlgmr.msra.gmra.mrb[4].mxu1 %v1975_v2  ;;  %845 = vmatprep.subr.bf16.mxu0 %v1981_v5  ;;  %v753_v2 = vlaneseq  ;;  %v751_v5 = vld [vmem:[#allocation4] sm:$0x3] }
  0x8e   :  { %1878 = vmatprep.mubr.msk.bf16.mxu1 %vm2211_vm0, %v2210_v42  ;;  %1863 = vmatpush3.bf16.msra.mxu1 %v2000_v20 }
  0x8f   :  { %1864 = vmatprep.subr.bf16.mxu1 %v2210_v42  ;;  %v2444_v3 = vshrl.u32 %v753_v2, 7  ;;  %v2075_v2 = vld [vmem:[#allocation7 + $0xf8] ss:$28 sps:$4 sm:$0xff]  }
  0x90   :  { %846 = vmatpush1.bf16.msra.mxu0 %v1979_v6 }
  0x91   :  { %847 = vmatprep.subr.bf16.mxu0 %v1984_v7  ;;  %v755_v4 = vsub.s32 0, %v2444_v3  ;;  %v759_v6 = vsub.s32 1, %v2444_v3 }
  0x92   :  { %1865 = vmatpush3.bf16.msra.mxu1 %v2001_v21 }
  0x93   :  { %1866 = vmatprep.subr.bf16.mxu1 %v2210_v42  ;;  %v756_v7 = vrot.slane %v751_v5, %v755_v4 }
  0x94   :  { %848 = vmatpush1.bf16.msra.mxu0 %v1982_v8  ;;  %v760_v8 = vrot.slane %v751_v5, %v759_v6  ;;  %v2078_v5 = vld [vmem:[#allocation7 + $0x12c] ss:$28 sps:$4 sm:$0xff]  }
  0x95   :  { %849 = vmatprep.subr.bf16.mxu0 %v1987_v9 }
  0x96   :  { %1867 = vmatpush3.bf16.msra.mxu1 %v2002_v49 }
  0x97   :  { %1868 = vmatprep.subr.bf16.mxu1 %v2210_v42 }
  0x98   :  { %850 = vmatpush1.bf16.msra.mxu0 %v1985_v10 }
  0x99   :  { %851 = vmatprep.subr.bf16.mxu0 %v1990_v11 }
  0x9a   :  { %1869 = vmatpush3.bf16.msra.mxu1 %v2003_v50 }
  0x9b   :  { %1870 = vmatprep.subr.bf16.mxu1 %v2210_v42 }
  0x9c   :  { %852 = vmatpush1.bf16.msra.mxu0 %v1988_v12 }
  0x9d   :  { %853 = vmatprep.subr.bf16.mxu0 %v1993_v13 }
  0x9e   :  { %1871 = vmatpush3.bf16.msra.mxu1 %v2004_v51 }
  0x9f   :  { %1872 = vmatprep.subr.bf16.mxu1 %v2210_v42 }
  0xa0   :  { %854 = vmatpush1.bf16.msra.mxu0 %v1991_v14 }
  0xa1   :  { %855 = vmatprep.subr.bf16.mxu0 %v1996_v15 }
  0xa2   :  { %1873 = vmatpush3.bf16.msra.mxu1 %v2005_v52 }
  0xa3   :  { %1874 = vmatprep.subr.bf16.mxu1 %v2210_v42 }
  0xa4   :  { %856 = vmatpush1.bf16.msra.mxu0 %v1994_v16 }
  0xa5   :  { %857 = vmatprep.subr.bf16.mxu0 %v1999_v17  ;;  %v887_v17 = vld [vmem:[%s2515_s9] sm:$0xff] }
  0xa6   :  { %1875 = vmatpush3.bf16.msra.mxu1 %v2006_v53  ;;  %v2056_v53 = vld [vmem:[#allocation7 + $0x10] ss:$28 sps:$4 sm:$0xff]  }
  0xa7   :  { %1876 = vmatprep.subr.bf16.mxu1 %v2210_v42 }
  0xa8   :  { %858 = vmatpush1.bf16.msra.mxu0 %v1997_v18 }
  0xa9   :  { %1393 = vmatprep.subr.bf16.mxu0 %v2010_v56  ;;  %v2062_v56 = vld [vmem:[#allocation7 + $0x4c] ss:$28 sps:$4 sm:$0xff]  }
  0xaa   :  { %1877 = vmatpush3.bf16.msra.mxu1 %v2007_v54  ;;  %v2059_v54 = vld [vmem:[#allocation7 + $0x18] ss:$28 sps:$4 sm:$0xff]  }
  0xab   :  { %1434 = vmatprep.subr.bf16.mxu1 %v2013_v57  ;;  %v2060_v57 = vld [vmem:[#allocation7 + $0x48] ss:$28 sps:$4 sm:$0xff]  }
 0x13e   :  { %v1765_v22 = vpop.f32.mrb[0].mxu0 }
 0x13f   :  { %v1766_v24 = vpop.f32.mrb[1].mxu0 }
 0x140   :  { %v1767_v25 = vadd.f32 %v1766_v24, %v1765_v22  ;;  %v1768_v26 = vpop.f32.mrb[2].mxu0  ;;  %v1787_v27 = vpop.f32.mrb[0].mxu1  ;;  %v2011_v22 = vld [vmem:[#allocation7 + $0x8] ss:$28 sps:$4 sm:$0xff]  }
 0x141   :  { %v1769_v28 = vpop.f32.mrb[3].mxu0  ;;  %v1788_v29 = vpop.f32.mrb[1].mxu1  ;;  %v2019_v24 = vld [vmem:[#allocation7 + $0x44] ss:$28 sps:$4 sm:$0xff]   ;;  %v2025_v26 = vld [vmem:[#allocation7 + $0x7c] ss:$28 sps:$4 sm:$0xff]  }
 0x142   :  { %v608_v30 = vadd.f32 %v1767_v25, %v1604_v23  ;;  %v1789_v31 = vadd.f32 %v1788_v29, %v1787_v27  ;;  %v1790_v32 = vpop.f32.mrb[2].mxu1  ;;  %v2017_v25 = vld [vmem:[#allocation7 + $0x40] ss:$28 sps:$4 sm:$0xff]   ;;  %v2023_v27 = vld [vmem:[#allocation7 + $0x78] ss:$28 sps:$4 sm:$0xff]  }
 0x143   :  { %v1791_v33 = vpop.f32.mrb[3].mxu1  ;;  %v2031_v28 = vld [vmem:[#allocation7 + $0xb4] ss:$28 sps:$4 sm:$0xff]   ;;  %v2040_v32 = vld [vmem:[#allocation7 + $0x11c] ss:$28 sps:$4 sm:$0xff]  }
 0x144   :  { %v648_v34 = vadd.f32 %v1789_v31, %v608_v30  ;;  %v2029_v29 = vld [vmem:[#allocation7 + $0xb0] ss:$28 sps:$4 sm:$0xff]   ;;  %v2035_v31 = vld [vmem:[#allocation7 + $0xe8] ss:$28 sps:$4 sm:$0xff]  }
 0x145   :  { %v2037_v30 = vld [vmem:[#allocation7 + $0xec] ss:$28 sps:$4 sm:$0xff]   ;;  %v2043_v33 = vld [vmem:[#allocation7 + $0x124] ss:$28 sps:$4 sm:$0xff]  }
 0x15e   :  { %v1809_v35 = vpop.f32.mrb[4].mxu0 }
 0x15f   :  { %v1810_v36 = vpop.f32.mrb[5].mxu0 }
 0x160   :  { %v1811_v37 = vadd.f32 %v1810_v36, %v1809_v35  ;;  %v1812_v38 = vpop.f32.mrb[6].mxu0  ;;  %v727_v39 = vpop.f32.mrb[4].mxu1  ;;  %v2041_v35 = vld [vmem:[#allocation7 + $0x120] ss:$28 sps:$4 sm:$0xff]   ;;  %v2046_v36 = vld [vmem:[#allocation7 + $0x154] ss:$28 sps:$4 sm:$0xff]  }
 0x161   :  { %v1813_v40 = vpop.f32.mrb[7].mxu0  ;;  %v1860_v41 = vpop.f32.mrb[5].mxu1  ;;  %v2044_v38 = vld [vmem:[#allocation7 + $0x150] ss:$28 sps:$4 sm:$0xff]  }
 0x162   :  { %v688_v43 = vadd.f32 %v1811_v37, %v648_v34  ;;  %v730_v44 = vpop.f32.mrb[6].mxu1  ;;  %v2038_v34 = vld [vmem:[#allocation7 + $0x118] ss:$28 sps:$4 sm:$0xff]   ;;  %v2052_v40 = vld [vmem:[#allocation7 + $0x18c] ss:$28 sps:$4 sm:$0xff]  }
 0x163   :  { %v1861_v45 = vpop.f32.mrb[7].mxu1  ;;  %v2049_v37 = vld [vmem:[#allocation7 + $0x15c] ss:$28 sps:$4 sm:$0xff]   ;;  %v2055_v41 = vld [vmem:[#allocation7 + $0x194] ss:$28 sps:$4 sm:$0xff]  }
 0x164   :  { %v728_v46 = vadd.f32 %v727_v39, %v688_v43  ;;  %v2047_v39 = vld [vmem:[#allocation7 + $0x158] ss:$28 sps:$4 sm:$0xff]   ;;  %v2050_v43 = vld [vmem:[#allocation7 + $0x188] ss:$28 sps:$4 sm:$0xff]   ;;  %v2053_v44 = vld [vmem:[#allocation7 + $0x190] ss:$28 sps:$4 sm:$0xff]  }
 0x165   :  { %v2058_v45 = vld [vmem:[#allocation7 + $0x14] ss:$28 sps:$4 sm:$0xff]  }
 0x166   :  { %2088 = vtanh.f32 %v728_v46  ;;  %v1684_v46 = vld [vmem:[#allocation6] ss:$0 sm:$0xff] }
 0x170   :  { %v2089_v47 = vpop.eup %2088 }
 0x171   :  { %v750_v48 = vpack.c.bf16 %v2089_v47, %v2089_v47 }
 0x173   :  { %876 = vmatmul.mubr.bf16.vlgmr.msra.gmra.mrb[8].mxu0 %v750_v48 }
 0x174   :  { %1425 = vmatprep.mubr.bf16.mxu0 %v2212_v19  ;;  %1394 = vmatpush1.bf16.msra.mxu0 %v2008_v55 }
 0x175   :  { %1395 = vmatprep.subr.bf16.mxu0 %v2016_v58  ;;  %v2063_v58 = vld [vmem:[#allocation7 + $0x50] ss:$28 sps:$4 sm:$0xff]  }
 0x178   :  { %1396 = vmatpush1.bf16.msra.mxu0 %v2014_v59  ;;  %v2066_v59 = vld [vmem:[#allocation7 + $0x84] ss:$28 sps:$4 sm:$0xff]  }
 0x179   :  { %1397 = vmatprep.subr.bf16.mxu0 %v2022_v60  ;;  %v2064_v60 = vld [vmem:[#allocation7 + $0x80] ss:$28 sps:$4 sm:$0xff]  }
 0x17c   :  { %1398 = vmatpush1.bf16.msra.mxu0 %v2020_v61  ;;  %v2067_v61 = vld [vmem:[#allocation7 + $0x88] ss:$28 sps:$4 sm:$0xff]  }
 0x17d   :  { %1399 = vmatprep.subr.bf16.mxu0 %v2028_v62  ;;  %v2070_v62 = vld [vmem:[#allocation7 + $0xbc] ss:$28 sps:$4 sm:$0xff]  }
 0x180   :  { %1400 = vmatpush1.bf16.msra.mxu0 %v2026_v63  ;;  %v2068_v63 = vld [vmem:[#allocation7 + $0xb8] ss:$28 sps:$4 sm:$0xff]  }
 0x181   :  { %1401 = vmatprep.subr.bf16.mxu0 %v2034_v0  ;;  %v2071_v0 = vld [vmem:[#allocation7 + $0xc0] ss:$28 sps:$4 sm:$0xff]  }
 0x184   :  { %1402 = vmatpush1.bf16.msra.mxu0 %v2032_v1  ;;  %v2074_v1 = vld [vmem:[#allocation7 + $0xf4] ss:$28 sps:$4 sm:$0xff]  }
 0x185   :  { %1403 = vmatprep.subr.bf16.mxu0 %v2040_v32 }
 0x188   :  { %1404 = vmatpush1.bf16.msra.mxu0 %v2038_v34 }
 0x189   :  { %1405 = vmatprep.subr.bf16.mxu0 %v2046_v36 }
 0x18c   :  { %1406 = vmatpush1.bf16.msra.mxu0 %v2044_v38 }
 0x18d   :  { %1407 = vmatprep.subr.bf16.mxu0 %v2052_v40 }
 0x190   :  { %1408 = vmatpush1.bf16.msra.mxu0 %v2050_v43 }
 0x191   :  { %1475 = vmatprep.subr.bf16.mxu0 %v2058_v45 }
 0x246   :  { %v877_v9 = vpop.f32.mrb[8].mxu0 }
 0x247   :  { %v878_v10 = vadd.f32 %v877_v9, %v756_v7  ;;  %v879_v11 = vpop.f32.mrb[9].mxu0  ;;  %v2076_v7 = vld [vmem:[#allocation7 + $0x128] ss:$28 sps:$4 sm:$0xff]  }
 0x248   :  { %v880_v12 = vadd.f32 %v879_v11, %v760_v8  ;;  %v881_v13 = vpop.f32.mrb[10].mxu0  ;;  %v2079_v8 = vld [vmem:[#allocation7 + $0x130] ss:$28 sps:$4 sm:$0xff]   ;;  %v2082_v9 = vld [vmem:[#allocation7 + $0x164] ss:$28 sps:$4 sm:$0xff]  }
 0x249   :  { %1591 = vst [vmem:[%s2517_s11] sm:$0xff] %v878_v10  ;;  %v882_v14 = vpop.f32.mrb[11].mxu0  ;;  %v2083_v11 = vld [vmem:[#allocation7 + $0x168] ss:$28 sps:$4 sm:$0xff]   ;;  %v2084_v13 = vld [vmem:[#allocation7 + $0x198] ss:$28 sps:$4 sm:$0xff]  }
 0x24a   :  { %v884_v15 = vmul.f32 0.5, %v880_v12  ;;  %1592 = vst [vmem:[%s2517_s11 + $0x8] sm:$0xff] %v880_v12  ;;  %v2086_v12 = vld [vmem:[#allocation7 + $0x19c] ss:$28 sps:$4 sm:$0xff]  }
 0x24b   :  { %v2087_v14 = vld [vmem:[#allocation7 + $0x1a0] ss:$28 sps:$4 sm:$0xff]  }
 0x24c   :  { %v885_v16 = vmul.f32 1.442695, %v884_v15  ;;  %v1080_v15 = vsub.s32 2, %v2444_v3 }
 0x24e   :  { %2090 = vpow2.f32 %v885_v16  ;;  %v1068_v16 = vld [vmem:[%s2514_s8] sm:$0xff] }
 0x258   :  { %v2091_v18 = vpop.eup %2090 }
 0x259   :  { %v888_v20 = vmul.f32 %v2091_v18, %v887_v17  ;;  %v1084_v17 = vsub.s32 3, %v2444_v3  ;;  %v1073_v18 = vrot.slane %v1068_v16, %v755_v4 }
 0x25b   :  { %v889_v21 = vadd.f32 %v888_v20, %v878_v10  ;;  %v2080_v10 = vld [vmem:[#allocation7 + $0x160] ss:$28 sps:$4 sm:$0xff]   ;;  %v1081_v20 = vrot.slane %v1068_v16, %v1080_v15 }
 0x25d   :  { %v906_v23 = vpack.c.bf16 %v889_v21, %v889_v21  ;;  %v1077_v21 = vrot.slane %v1068_v16, %v759_v6 }
 0x25f   :  { %1879 = vmatmul.mubr.bf16.vlgmr.msra.gmra.mrb[8].mxu1 %v906_v23 }
 0x260   :  { %1435 = vmatpush1.bf16.msra.mxu1 %v2011_v22  ;;  %1466 = vmatprep.mubr.bf16.mxu1 %v2212_v19 }
 0x261   :  { %1436 = vmatprep.subr.bf16.mxu1 %v2019_v24 }
 0x264   :  { %1437 = vmatpush1.bf16.msra.mxu1 %v2017_v25 }
 0x265   :  { %1438 = vmatprep.subr.bf16.mxu1 %v2025_v26 }
 0x268   :  { %1439 = vmatpush1.bf16.msra.mxu1 %v2023_v27 }
 0x269   :  { %1440 = vmatprep.subr.bf16.mxu1 %v2031_v28 }
 0x26c   :  { %1441 = vmatpush1.bf16.msra.mxu1 %v2029_v29 }
 0x26d   :  { %1442 = vmatprep.subr.bf16.mxu1 %v2037_v30 }
 0x270   :  { %1443 = vmatpush1.bf16.msra.mxu1 %v2035_v31 }
 0x271   :  { %1444 = vmatprep.subr.bf16.mxu1 %v2043_v33 }
 0x274   :  { %1445 = vmatpush1.bf16.msra.mxu1 %v2041_v35 }
 0x275   :  { %1446 = vmatprep.subr.bf16.mxu1 %v2049_v37 }
 0x278   :  { %1447 = vmatpush1.bf16.msra.mxu1 %v2047_v39 }
 0x279   :  { %1448 = vmatprep.subr.bf16.mxu1 %v2055_v41 }
 0x27c   :  { %1449 = vmatpush1.bf16.msra.mxu1 %v2053_v44 }
 0x27d   :  { %1882 = vmatprep.subr.bf16.mxu1 %v2210_v42 }
 0x332   :  { %v996_v47 = vpop.f32.mrb[8].mxu1 }
 0x333   :  { %v997_v48 = vadd.f32 %v1684_v46, %v996_v47  ;;  %v1880_v49 = vpop.f32.mrb[9].mxu1 }
 0x334   :  { %v999_v50 = vpop.f32.mrb[10].mxu1  ;;  %v1088_v49 = vsub.s32 4, %v2444_v3 }
 0x335   :  { %2092 = vtanh.f32 %v997_v48  ;;  %v1881_v51 = vpop.f32.mrb[11].mxu1  ;;  %v1096_v50 = vsub.s32 6, %v2444_v3 }
 0x336   :  { %v1092_v51 = vsub.s32 5, %v2444_v3 }
 0x33f   :  { %v2093_v52 = vpop.eup %2092 }
 0x340   :  { %v1067_v55 = vpack.c.bf16 %v2093_v52, %v2093_v52  ;;  %v1089_v52 = vrot.slane %v1068_v16, %v1088_v49 }
 0x342   :  { %1426 = vmatmul.mubr.bf16.vlgmr.msra.gmra.mrb[12].mxu0 %v1067_v55  ;;  %1467 = vmatmul.mubr.bf16.vlgmr.msra.gmra.mrb[12].mxu1 %v1067_v55 }
 0x343   :  { %1476 = vmatpush1.bf16.msra.mxu0 %v2056_v53  ;;  %1883 = vmatpush3.bf16.msra.mxu1 %v2059_v54  ;;  %v1097_v53 = vrot.slane %v1068_v16, %v1096_v50  ;;  %v1093_v54 = vrot.slane %v1068_v16, %v1092_v51 }
 0x344   :  { %1477 = vmatprep.subr.bf16.mxu0 %v2062_v56  ;;  %1884 = vmatprep.subr.bf16.mxu1 %v2210_v42 }
 0x345   :  { %1507 = vmatprep.mubr.bf16.mxu0 %v2212_v19  ;;  %1898 = vmatprep.mubr.msk.bf16.mxu1 %vm2211_vm0, %v2210_v42  ;;  %v2072_v19 = vld [vmem:[#allocation7 + $0xf0] ss:$28 sps:$4 sm:$0xff]  }
 0x347   :  { %1478 = vmatpush1.bf16.msra.mxu0 %v2060_v57  ;;  %1885 = vmatpush3.bf16.msra.mxu1 %v2063_v58 }
 0x348   :  { %1479 = vmatprep.subr.bf16.mxu0 %v2066_v59  ;;  %1886 = vmatprep.subr.bf16.mxu1 %v2210_v42 }
 0x34b   :  { %1480 = vmatpush1.bf16.msra.mxu0 %v2064_v60  ;;  %1887 = vmatpush3.bf16.msra.mxu1 %v2067_v61 }
 0x34c   :  { %1481 = vmatprep.subr.bf16.mxu0 %v2070_v62  ;;  %1888 = vmatprep.subr.bf16.mxu1 %v2210_v42 }
 0x34f   :  { %1482 = vmatpush1.bf16.msra.mxu0 %v2068_v63  ;;  %1889 = vmatpush3.bf16.msra.mxu1 %v2071_v0 }
 0x350   :  { %1483 = vmatprep.subr.bf16.mxu0 %v2074_v1  ;;  %1890 = vmatprep.subr.bf16.mxu1 %v2210_v42 }
 0x353   :  { %1484 = vmatpush1.bf16.msra.mxu0 %v2072_v19  ;;  %1891 = vmatpush3.bf16.msra.mxu1 %v2075_v2 }
 0x354   :  { %1485 = vmatprep.subr.bf16.mxu0 %v2078_v5  ;;  %1892 = vmatprep.subr.bf16.mxu1 %v2210_v42 }
 0x357   :  { %1486 = vmatpush1.bf16.msra.mxu0 %v2076_v7  ;;  %1893 = vmatpush3.bf16.msra.mxu1 %v2079_v8 }
 0x358   :  { %1487 = vmatprep.subr.bf16.mxu0 %v2082_v9  ;;  %1894 = vmatprep.subr.bf16.mxu1 %v2210_v42 }
 0x35b   :  { %1488 = vmatpush1.bf16.msra.mxu0 %v2080_v10  ;;  %1895 = vmatpush3.bf16.msra.mxu1 %v2083_v11 }
 0x35c   :  { %1489 = vmatprep.subr.bf16.mxu0 %v2086_v12  ;;  %1896 = vmatprep.subr.bf16.mxu1 %v2210_v42  ;;  %v1085_v42 = vrot.slane %v1068_v16, %v1084_v17 }
 0x35f   :  { %1490 = vmatpush1.bf16.msra.mxu0 %v2084_v13  ;;  %1897 = vmatpush3.bf16.msra.mxu1 %v2087_v14 }
 0x362   :  { %1508 = vmatmul.mubr.bf16.vlgmr.msra.gmra.mrb[16].mxu0 %v1067_v55  ;;  %1899 = vmatmul.mubr.bf16.vlgmr.msra.gmra.mrb[16].mxu1 %v1067_v55 }
 0x415   :  { %v1427_v22 = vpop.f32.mrb[12].mxu0  ;;  %v1468_v23 = vpop.f32.mrb[12].mxu1 }
 0x416   :  { %v1428_v24 = vadd.f32 %v1427_v22, %v1073_v18  ;;  %v1469_v25 = vadd.f32 %v1468_v23, %v1081_v20  ;;  %v1429_v26 = vpop.f32.mrb[13].mxu0  ;;  %v1470_v27 = vpop.f32.mrb[13].mxu1 }
 0x417   :  { %v1430_v28 = vadd.f32 %v1429_v26, %v1077_v21  ;;  %v1471_v29 = vadd.f32 %v1470_v27, %v1085_v42  ;;  %v1431_v30 = vpop.f32.mrb[14].mxu0  ;;  %v1472_v31 = vpop.f32.mrb[14].mxu1 }
 0x418   :  { %v1556_v32 = vmul.f32 0.5, %v1428_v24  ;;  %v1558_v33 = vmul.f32 0.5, %v1469_v25  ;;  %v1432_v34 = vpop.f32.mrb[15].mxu0  ;;  %v1473_v35 = vpop.f32.mrb[15].mxu1 }
 0x419   :  { %v1557_v4 = vmul.f32 0.5, %v1430_v28  ;;  %v1559_v36 = vmul.f32 0.5, %v1471_v29 }
 0x41a   :  { %2094 = vtanh.f32 %v1556_v32 }
 0x41b   :  { %2096 = vtanh.f32 %v1558_v33 }
 0x41c   :  { %2098 = vtanh.f32 %v1557_v4 }
 0x41d   :  { %2100 = vtanh.f32 %v1559_v36 }
 0x424   :  { %v2095_v6 = vpop.eup %2094 }
 0x425   :  { %v2097_v37 = vpop.eup %2096  ;;  %v1570_v38 = vadd.f32 1.0, %v2095_v6 }
 0x426   :  { %v2099_v39 = vpop.eup %2098  ;;  %v1572_v40 = vadd.f32 1.0, %v2097_v37 }
 0x427   :  { %v2101_v41 = vpop.eup %2100  ;;  %v1577_v43 = vmul.f32 0.5, %v1570_v38  ;;  %v1571_v44 = vadd.f32 1.0, %v2099_v39 }
 0x428   :  { %v1579_v45 = vmul.f32 0.5, %v1572_v40  ;;  %v1573_v46 = vadd.f32 1.0, %v2101_v41 }
 0x429   :  { %1584 = vst [vmem:[%s2516_s10] sm:$0xff] %v1577_v43  ;;  %v1578_v47 = vmul.f32 0.5, %v1571_v44 }
 0x42a   :  { %1586 = vst [vmem:[%s2516_s10 + $0x10] sm:$0xff] %v1579_v45  ;;  %v1580_v48 = vmul.f32 0.5, %v1573_v46 }
 0x42b   :  { %1585 = vst [vmem:[%s2516_s10 + $0x8] sm:$0xff] %v1578_v47 }
 0x42c   :  { %1587 = vst [vmem:[%s2516_s10 + $0x18] sm:$0xff] %v1580_v48 }
 0x435   :  { %v1509_v55 = vpop.f32.mrb[16].mxu0  ;;  %v1550_v56 = vpop.f32.mrb[16].mxu1 }
 0x436   :  { %v1510_v57 = vadd.f32 %v1509_v55, %v1089_v52  ;;  %v1551_v58 = vadd.f32 %v1550_v56, %v1097_v53  ;;  %v1511_v59 = vpop.f32.mrb[17].mxu0  ;;  %v1900_v60 = vpop.f32.mrb[17].mxu1 }
 0x437   :  { %v1512_v61 = vadd.f32 %v1511_v59, %v1093_v54  ;;  %v1513_v62 = vpop.f32.mrb[18].mxu0  ;;  %v1553_v63 = vpop.f32.mrb[18].mxu1 }
 0x438   :  { %v1560_v0 = vmul.f32 0.5, %v1510_v57  ;;  %v1562_v1 = vmul.f32 0.5, %v1551_v58  ;;  %v1514_v19 = vpop.f32.mrb[19].mxu0  ;;  %v1901_v2 = vpop.f32.mrb[19].mxu1 }
 0x439   :  { %v1561_v5 = vmul.f32 0.5, %v1512_v61 }
 0x43a   :  { %2102 = vtanh.f32 %v1560_v0 }
 0x43b   :  { %2104 = vtanh.f32 %v1562_v1 }
 0x43c   :  { %2106 = vtanh.f32 %v1561_v5 }
 0x444   :  { %v2103_v3 = vpop.eup %2102 }
 0x445   :  { %v2105_v7 = vpop.eup %2104  ;;  %v1574_v8 = vadd.f32 1.0, %v2103_v3 }
 0x446   :  { %v2107_v9 = vpop.eup %2106  ;;  %v1576_v10 = vadd.f32 1.0, %v2105_v7 }
 0x447   :  { %v1581_v11 = vmul.f32 0.5, %v1574_v8  ;;  %v1575_v12 = vadd.f32 1.0, %v2107_v9 }
 0x448   :  { %v1583_v13 = vmul.f32 0.5, %v1576_v10 }
 0x449   :  { %1588 = vst [vmem:[%s2516_s10 + $0x20] sm:$0xff] %v1581_v11  ;;  %v1582_v14 = vmul.f32 0.5, %v1575_v12 }
 0x44a   :  { %1590 = vst [vmem:[%s2516_s10 + $0x30] sm:$0xff] %v1583_v13 }
 0x44b   :  { %1589 = vst [vmem:[%s2516_s10 + $0x28] sm:$0xff] %v1582_v14 }
 0x44c   :  { %1601 = vsyncpa [#allocation3], 1 }
 0x44d   :  { %1602 = vsyncpa [#allocation5], 1 }
 0x44e   :  { %1603 = vsyncpa [#allocation8], 1 }

</bundles_post_ra>
